<compile_context>
chip_gen: v6e
topology: v6e:2x2x1
jax: 0.10.0
libtpu: 0.0.40
codegen_flags: <defaults>
</compile_context>

<pallas_src>
import functools

import jax
import jax.numpy as jnp
from jax.experimental import pallas as pl
from jax.experimental.pallas import tpu as pltpu

OUT_PAD = 128  # lane-dense packed output width (probs lanes 0..A-1, value lane A)


def actor_critic_fused_kernel(
    x_ref, w1_ref, b1_ref, w2_ref, b2_ref, w3_ref, b3_ref, out_ref,
    *, action_dim,
):
    cdt = w1_ref.dtype  # matmul compute dtype (f32 or bf16); accumulate in f32
    x = x_ref[...]      # [TB, S] f32

    # layer 1+2: fused actor|critic hidden states, h = [h_actor | h_critic]
    h = jnp.tanh(
        jnp.dot(x.astype(cdt), w1_ref[...], preferred_element_type=jnp.float32)
        + b1_ref[...]
    )
    h = jnp.tanh(
        jnp.dot(h.astype(cdt), w2_ref[...], preferred_element_type=jnp.float32)
        + b2_ref[...]
    )

    # layer 3: packed head -> [TB, 128]; lanes 0..A-1 actor logits, lane A value
    z = (
        jnp.dot(h.astype(cdt), w3_ref[...], preferred_element_type=jnp.float32)
        + b3_ref[...]
    )

    # masked, numerically-stable softmax over the action lanes only.
    # exp(masked - m) is exactly 0 on masked lanes (no second select, no inf
    # from exp-ing the value lane).
    lane = jax.lax.broadcasted_iota(jnp.int32, z.shape, 1)
    is_logit = lane < action_dim
    masked = jnp.where(is_logit, z, jnp.float32(-1e30))
    m = jnp.max(masked, axis=-1, keepdims=True)
    e = jnp.exp(masked - m)
    denom = jnp.sum(e, axis=-1, keepdims=True)
    probs = e * pl.reciprocal(denom, approx=False)

    # packed output: probs in action lanes, raw z elsewhere (lane A = value,
    # lanes A+1..127 are zero because the w3/b3 padding is zero).
    out_ref[...] = jnp.where(is_logit, probs, z)


def pack_params(p, matmul_dtype=jnp.float32):
    """Build fused block-diagonal weights ONCE (hoisted out of the step path).

    Weights are cast to `matmul_dtype` (bf16 on v6e/v7x halves weight DMA and
    doubles MXU rate); biases stay f32 since they are added post-accumulation.
    """
    S, H = p["wa1"].shape
    A = p["wa3"].shape[1]

    w1 = jnp.concatenate([p["wa1"], p["wv1"]], axis=1).astype(matmul_dtype)  # [S, 2H]
    b1 = jnp.concatenate([p["ba1"], p["bv1"]], axis=1)                       # [1, 2H] f32

    # Scaling guard: at n_latent_var >= 128, split layer 2 back into two HxH
    # dots instead of this block-diagonal (2H)x(2H) matmul (it would double
    # layer-2 MXU passes and 4x its weight bytes at MXU-tile size). At H=32
    # it is free: one MXU pass either way.
    zH = jnp.zeros((H, H), jnp.float32)
    w2 = jnp.block([[p["wa2"], zH], [zH, p["wv2"]]]).astype(matmul_dtype)    # [2H, 2H]
    b2 = jnp.concatenate([p["ba2"], p["bv2"]], axis=1)                       # [1, 2H] f32

    w3 = jnp.zeros((2 * H, OUT_PAD), jnp.float32)
    w3 = w3.at[:H, :A].set(p["wa3"])
    w3 = w3.at[H:, A:A + 1].set(p["wv3"])
    w3 = w3.astype(matmul_dtype)                                             # [2H, 128]
    b3 = jnp.zeros((1, OUT_PAD), jnp.float32)
    b3 = b3.at[:, :A].set(p["ba3"])
    b3 = b3.at[:, A:A + 1].set(p["bv3"])                                     # [1, 128] f32

    return w1, b1, w2, b2, w3, b3


@functools.partial(jax.jit, static_argnames=("action_dim", "tile_b"))
def actor_critic_forward(x, w1, b1, w2, b2, w3, b3, *, action_dim, tile_b=256):
    """x: [B, state_dim] f32. Returns (action_probs [B, A], value [B, 1])."""
    B, S = x.shape
    H2 = w2.shape[0]

    # Pad the batch to a multiple of the tile; padded rows are sliced off.
    Bp = pl.cdiv(B, tile_b) * tile_b
    if Bp != B:
        x = jnp.pad(x, ((0, Bp - B), (0, 0)))
    grid = (Bp // tile_b,)

    def resident(shape):
        # Whole-array block, same block index every grid step -> the fused
        # weights are DMA'd once and stay VMEM-resident across the batch grid.
        return pl.BlockSpec(shape, lambda i: (0, 0))

    wbytes = w1.dtype.itemsize
    flops = 2 * Bp * (S * H2 + H2 * H2 + H2 * OUT_PAD)
    transcendentals = Bp * (2 * H2 + OUT_PAD + 1)  # tanh x2 layers + exp + recip
    bytes_accessed = (
        4 * Bp * S
        + wbytes * (S * H2 + H2 * H2 + H2 * OUT_PAD)
        + 4 * (H2 + H2 + OUT_PAD)
        + 4 * Bp * OUT_PAD
    )

    packed = pl.pallas_call(
        functools.partial(actor_critic_fused_kernel, action_dim=action_dim),
        out_shape=jax.ShapeDtypeStruct((Bp, OUT_PAD), jnp.float32),
        grid=grid,
        in_specs=[
            pl.BlockSpec((tile_b, S), lambda i: (i, 0)),  # x: tiled over batch
            resident(w1.shape), resident(b1.shape),
            resident(w2.shape), resident(b2.shape),
            resident(w3.shape), resident(b3.shape),
        ],
        out_specs=pl.BlockSpec((tile_b, OUT_PAD), lambda i: (i, 0)),
        compiler_params=pltpu.CompilerParams(
            dimension_semantics=("parallel",),  # shard tiles across v7x's 2 TCs
        ),
        cost_estimate=pl.CostEstimate(
            flops=flops,
            transcendentals=transcendentals,
            bytes_accessed=bytes_accessed,
        ),
    )(x, w1, b1, w2, b2, w3, b3)

    probs = packed[:B, :action_dim]
    value = packed[:B, action_dim:action_dim + 1]
    return probs, value


def init_params(key, state_dim, action_dim, n_latent_var):
    """Deterministic synthetic init mimicking nn.Linear shapes.

    Weights are stored transposed relative to PyTorch ([in, out] instead of
    [out, in]) so the kernel can do x @ W directly.
    """
    keys = jax.random.split(key, 12)

    def lin(kw, kb, fan_in, fan_out):
        bound = 1.0 / jnp.sqrt(jnp.float32(fan_in))
        w = jax.random.uniform(kw, (fan_in, fan_out), jnp.float32, -bound, bound)
        b = jax.random.uniform(kb, (1, fan_out), jnp.float32, -bound, bound)
        return w, b

    wa1, ba1 = lin(keys[0], keys[1], state_dim, n_latent_var)
    wa2, ba2 = lin(keys[2], keys[3], n_latent_var, n_latent_var)
    wa3, ba3 = lin(keys[4], keys[5], n_latent_var, action_dim)
    wv1, bv1 = lin(keys[6], keys[7], state_dim, n_latent_var)
    wv2, bv2 = lin(keys[8], keys[9], n_latent_var, n_latent_var)
    wv3, bv3 = lin(keys[10], keys[11], n_latent_var, 1)

    return dict(
        wa1=wa1, ba1=ba1, wa2=wa2, ba2=ba2, wa3=wa3, ba3=ba3,
        wv1=wv1, bv1=bv1, wv2=wv2, bv2=bv2, wv3=wv3, bv3=bv3,
    )


def reference_forward(x, p):
    h = jnp.tanh(x @ p["wa1"] + p["ba1"])
    h = jnp.tanh(h @ p["wa2"] + p["ba2"])
    logits = h @ p["wa3"] + p["ba3"]
    probs = jax.nn.softmax(logits, axis=-1)
    hv = jnp.tanh(x @ p["wv1"] + p["bv1"])
    hv = jnp.tanh(hv @ p["wv2"] + p["bv2"])
    value = hv @ p["wv3"] + p["bv3"]
    return probs, value


if __name__ == "__main__":
    # LunarLander-v2: state_dim = 8, action_dim = 4, small hidden.  Timesteps
    # are batched (rollout-style) so the MXU M dimension is actually filled.
    state_dim = 8
    action_dim = 4
    n_latent_var = 32
    batch = 512
    tile_b = 256  # 2 grid steps; >= MXU row count on v6e/v7x

    key = jax.random.PRNGKey(0)
    k_params, k_state, k_sample = jax.random.split(key, 3)

    params = init_params(k_params, state_dim, action_dim, n_latent_var)
    states = jax.random.normal(k_state, (batch, state_dim), jnp.float32)

    # ---- f32 path (exact; right choice on v5e) -----------------------------
    fused_f32 = pack_params(params, jnp.float32)  # packed ONCE, outside the step
    probs, value = actor_critic_forward(
        states, *fused_f32, action_dim=action_dim, tile_b=tile_b)
    probs = jax.block_until_ready(probs)
    value = jax.block_until_ready(value)

    ref_probs, ref_value = reference_forward(states, params)
    assert probs.shape == (batch, action_dim)
    assert value.shape == (batch, 1)
    assert jnp.allclose(probs, ref_probs, atol=1e-5, rtol=1e-5)
    assert jnp.allclose(value, ref_value, atol=1e-5, rtol=1e-5)
    assert jnp.allclose(jnp.sum(probs, axis=-1), 1.0, atol=1e-5)

    # ---- bf16 matmul path (v6e/v7x per-step win; f32 accumulate) -----------
    fused_bf16 = pack_params(params, jnp.bfloat16)
    probs_bf, value_bf = actor_critic_forward(
        states, *fused_bf16, action_dim=action_dim, tile_b=tile_b)
    probs_bf = jax.block_until_ready(probs_bf)
    value_bf = jax.block_until_ready(value_bf)
    assert jnp.allclose(probs_bf, ref_probs, atol=5e-2, rtol=5e-2)
    assert jnp.allclose(value_bf, ref_value, atol=5e-2, rtol=5e-2)

    # act(): Categorical(action_probs).sample()  (glue, outside the kernel)
    actions = jax.random.categorical(k_sample, jnp.log(probs), axis=-1)
    actions = jax.block_until_ready(actions)
    assert actions.shape == (batch,)

    print("KERNEL_OK")
</pallas_src>

<mosaic_0001>
module attributes {stable_mosaic.version = 11 : i64} {
  func.func @actor_critic_fused_kernel(%arg0: i32, %arg1: memref<256x8xf32, #tpu.memory_space<vmem>>, %arg2: memref<8x64xf32, #tpu.memory_space<vmem>>, %arg3: memref<1x64xf32, #tpu.memory_space<vmem>>, %arg4: memref<64x64xf32, #tpu.memory_space<vmem>>, %arg5: memref<1x64xf32, #tpu.memory_space<vmem>>, %arg6: memref<64x128xf32, #tpu.memory_space<vmem>>, %arg7: memref<1x128xf32, #tpu.memory_space<vmem>>, %arg8: memref<256x128xf32, #tpu.memory_space<vmem>>) attributes {dimension_semantics = [#tpu.dimension_semantics<parallel>], iteration_bounds = array<i64: 2>, scalar_prefetch = 0 : i64, scratch_operands = 0 : i64, tpu.core_type = #tpu.core_type<tc>, window_params = [{transform_indices = @transform_0, window_bounds = array<i64: 256, 8>}, {pipeline_mode = #tpu.pipeline_mode<synchronous>, transform_indices = @transform_1, window_bounds = array<i64: 8, 64>}, {pipeline_mode = #tpu.pipeline_mode<synchronous>, transform_indices = @transform_2, window_bounds = array<i64: 1, 64>}, {pipeline_mode = #tpu.pipeline_mode<synchronous>, transform_indices = @transform_3, window_bounds = array<i64: 64, 64>}, {pipeline_mode = #tpu.pipeline_mode<synchronous>, transform_indices = @transform_4, window_bounds = array<i64: 1, 64>}, {pipeline_mode = #tpu.pipeline_mode<synchronous>, transform_indices = @transform_5, window_bounds = array<i64: 64, 128>}, {pipeline_mode = #tpu.pipeline_mode<synchronous>, transform_indices = @transform_6, window_bounds = array<i64: 1, 128>}, {transform_indices = @transform_7, window_bounds = array<i64: 256, 128>}]} {
    %c0 = arith.constant 0 : index
    %c0_0 = arith.constant 0 : index
    %0 = vector.load %arg1[%c0, %c0_0] : memref<256x8xf32, #tpu.memory_space<vmem>>, vector<256x8xf32>
    %c0_1 = arith.constant 0 : index
    %c0_2 = arith.constant 0 : index
    %1 = vector.load %arg2[%c0_1, %c0_2] : memref<8x64xf32, #tpu.memory_space<vmem>>, vector<8x64xf32>
    %cst = arith.constant dense<0.000000e+00> : vector<256x64xf32>
    %2 = tpu.matmul %0, %1, %cst {dimension_numbers = #tpu.dot_dimension_numbers<[1], [0], [0], [1], [0, 0, 1, 1], [], []>} : vector<256x8xf32>, vector<8x64xf32>, vector<256x64xf32> -> vector<256x64xf32>
    %c0_3 = arith.constant 0 : index
    %c0_4 = arith.constant 0 : index
    %3 = vector.load %arg3[%c0_3, %c0_4] : memref<1x64xf32, #tpu.memory_space<vmem>>, vector<1x64xf32>
    %4 = vector.broadcast %3 : vector<1x64xf32> to vector<256x64xf32>
    %5 = arith.addf %2, %4 : vector<256x64xf32>
    %6 = math.tanh %5 : vector<256x64xf32>
    %c0_5 = arith.constant 0 : index
    %c0_6 = arith.constant 0 : index
    %7 = vector.load %arg4[%c0_5, %c0_6] : memref<64x64xf32, #tpu.memory_space<vmem>>, vector<64x64xf32>
    %cst_7 = arith.constant dense<0.000000e+00> : vector<256x64xf32>
    %8 = tpu.matmul %6, %7, %cst_7 {dimension_numbers = #tpu.dot_dimension_numbers<[1], [0], [0], [1], [0, 0, 1, 1], [], []>} : vector<256x64xf32>, vector<64x64xf32>, vector<256x64xf32> -> vector<256x64xf32>
    %c0_8 = arith.constant 0 : index
    %c0_9 = arith.constant 0 : index
    %9 = vector.load %arg5[%c0_8, %c0_9] : memref<1x64xf32, #tpu.memory_space<vmem>>, vector<1x64xf32>
    %10 = vector.broadcast %9 : vector<1x64xf32> to vector<256x64xf32>
    %11 = arith.addf %8, %10 : vector<256x64xf32>
    %12 = math.tanh %11 : vector<256x64xf32>
    %c0_10 = arith.constant 0 : index
    %c0_11 = arith.constant 0 : index
    %13 = vector.load %arg6[%c0_10, %c0_11] : memref<64x128xf32, #tpu.memory_space<vmem>>, vector<64x128xf32>
    %cst_12 = arith.constant dense<0.000000e+00> : vector<256x128xf32>
    %14 = tpu.matmul %12, %13, %cst_12 {dimension_numbers = #tpu.dot_dimension_numbers<[1], [0], [0], [1], [0, 0, 1, 1], [], []>} : vector<256x64xf32>, vector<64x128xf32>, vector<256x128xf32> -> vector<256x128xf32>
    %c0_13 = arith.constant 0 : index
    %c0_14 = arith.constant 0 : index
    %15 = vector.load %arg7[%c0_13, %c0_14] : memref<1x128xf32, #tpu.memory_space<vmem>>, vector<1x128xf32>
    %16 = vector.broadcast %15 : vector<1x128xf32> to vector<256x128xf32>
    %17 = arith.addf %14, %16 : vector<256x128xf32>
    %18 = tpu.iota {dimensions = array<i32: 1>} : vector<256x128xi32>
    %c4_i32 = arith.constant 4 : i32
    %19 = vector.broadcast %c4_i32 : i32 to vector<256x128xi32>
    %20 = arith.cmpi slt, %18, %19 : vector<256x128xi32>
    %cst_15 = arith.constant -1.000000e+30 : f32
    %21 = vector.broadcast %cst_15 : f32 to vector<256x128xf32>
    %22 = arith.select %20, %17, %21 : vector<256x128xi1>, vector<256x128xf32>
    %cst_16 = arith.constant dense<0xFF800000> : vector<256xf32>
    %23 = vector.multi_reduction <maximumf>, %22, %cst_16 [1] : vector<256x128xf32> to vector<256xf32>
    %24 = vector.shape_cast %23 : vector<256xf32> to vector<256x1xf32>
    %25 = vector.broadcast %24 : vector<256x1xf32> to vector<256x128xf32>
    %26 = arith.subf %22, %25 : vector<256x128xf32>
    %27 = math.exp %26 : vector<256x128xf32>
    %cst_17 = arith.constant dense<0.000000e+00> : vector<256xf32>
    %28 = vector.multi_reduction <add>, %27, %cst_17 [1] : vector<256x128xf32> to vector<256xf32>
    %29 = vector.shape_cast %28 : vector<256xf32> to vector<256x1xf32>
    %30 = tpu.reciprocal %29 : vector<256x1xf32> -> vector<256x1xf32>
    %31 = vector.broadcast %30 : vector<256x1xf32> to vector<256x128xf32>
    %32 = arith.mulf %27, %31 : vector<256x128xf32>
    %33 = arith.select %20, %32, %17 : vector<256x128xi1>, vector<256x128xf32>
    %c0_18 = arith.constant 0 : index
    %c0_19 = arith.constant 0 : index
    %34 = vector.load %arg8[%c0_18, %c0_19] : memref<256x128xf32, #tpu.memory_space<vmem>>, vector<256x128xf32>
    tpu.vector_store %arg8[%c0_18, %c0_19], %33 {strides = array<i32>} : memref<256x128xf32, #tpu.memory_space<vmem>>, vector<256x128xf32>,
    return
  }
  func.func @transform_0(%arg0: i32) -> (i32, i32) {
    %c0_i32 = arith.constant 0 : i32
    %c0_i32_0 = arith.constant 0 : i32
    return %arg0, %c0_i32 : i32, i32
  }
  func.func @transform_1(%arg0: i32) -> (i32, i32) {
    %c0_i32 = arith.constant 0 : i32
    %c0_i32_0 = arith.constant 0 : i32
    %c0_i32_1 = arith.constant 0 : i32
    return %c0_i32, %c0_i32_0 : i32, i32
  }
  func.func @transform_2(%arg0: i32) -> (i32, i32) {
    %c0_i32 = arith.constant 0 : i32
    %c0_i32_0 = arith.constant 0 : i32
    %c0_i32_1 = arith.constant 0 : i32
    return %c0_i32, %c0_i32_0 : i32, i32
  }
  func.func @transform_3(%arg0: i32) -> (i32, i32) {
    %c0_i32 = arith.constant 0 : i32
    %c0_i32_0 = arith.constant 0 : i32
    %c0_i32_1 = arith.constant 0 : i32
    return %c0_i32, %c0_i32_0 : i32, i32
  }
  func.func @transform_4(%arg0: i32) -> (i32, i32) {
    %c0_i32 = arith.constant 0 : i32
    %c0_i32_0 = arith.constant 0 : i32
    %c0_i32_1 = arith.constant 0 : i32
    return %c0_i32, %c0_i32_0 : i32, i32
  }
  func.func @transform_5(%arg0: i32) -> (i32, i32) {
    %c0_i32 = arith.constant 0 : i32
    %c0_i32_0 = arith.constant 0 : i32
    %c0_i32_1 = arith.constant 0 : i32
    return %c0_i32, %c0_i32_0 : i32, i32
  }
  func.func @transform_6(%arg0: i32) -> (i32, i32) {
    %c0_i32 = arith.constant 0 : i32
    %c0_i32_0 = arith.constant 0 : i32
    %c0_i32_1 = arith.constant 0 : i32
    return %c0_i32, %c0_i32_0 : i32, i32
  }
  func.func @transform_7(%arg0: i32) -> (i32, i32) {
    %c0_i32 = arith.constant 0 : i32
    %c0_i32_0 = arith.constant 0 : i32
    return %arg0, %c0_i32 : i32, i32
  }
}

</mosaic_0001>

<bundles_post_ra>
// kernel: actor_critic_forward.1
= control target key start
LH: loop header
LB: loop body
LE: loop exit
PB: predicated region body
PF: predicated region fallthrough
CT: control target
= control target key end

     0   :  { %s2539_s24 = smov 0   ;;  %s3416_s0 = inlined_call_operand.vmem [shape: f32[512,8], index: 0, kind: input, shape index: {}]   ;;  %s3417_s1 = inlined_call_operand.vmem [shape: f32[8,64], index: 1, kind: input, shape index: {}]   ;;  %s3418_s2 = inlined_call_operand.vmem [shape: f32[1,64], index: 2, kind: input, shape index: {}]   ;;  %s3419_s3 = inlined_call_operand.vmem [shape: f32[64,64], index: 3, kind: input, shape index: {}]   ;;  %s3420_s4 = inlined_call_operand.vmem [shape: f32[1,64], index: 4, kind: input, shape index: {}]   ;;  %s3421_s5 = inlined_call_operand.vmem [shape: f32[64,128], index: 5, kind: input, shape index: {}]   ;;  %s3422_s6 = inlined_call_operand.vmem [shape: f32[1,128], index: 6, kind: input, shape index: {}]   ;;  %s3423_s7 = inlined_call_operand.vmem [shape: f32[512,128], index: 7, kind: output, shape index: {}]  }
   0x1 LB: > { %s1824_s25 = sadd.s32 4294967295, %s2497_s24   ;;  %p1828_p0 = scmp.ge.s32.totalorder %s2497_s24, 1  ;;  %s2497_s24 = sphi %s2539_s24, %s17_s24  }
   0x2   : > { %p238_p1 = scmp.lt.s32.totalorder %s2497_s24, 3 }
   0x4   : > { %p239_p2 = pnand %p1828_p0, %p238_p1 }
   0x6   : > { %242 = sbr.rel (%p239_p2) target bundleno = 1016 (0x3f8), region = 48 }
   0xb   : > { %v314_v0 = vld [vmem:[%s3417_s1] sm:$0xff]  ;;  %s1829_s28 = sshll.u32 %s1824_s25, 5  ;;  %v683_v1 = vld [vmem:[%s3419_s3 + $0x38] sm:$0xff]  ;;  %vm322_vm0 = vcmask 64512   ;;  %v682_v10 = vld [vmem:[%s3419_s3 + $0x30] sm:$0xff]  ;;  %vm691_vm1 = vcmask 523264  }
   0xc   : > { %2047 = vmatprep.subr.mxu0 %v314_v0  ;;  %p271_p3 = scmp.lt.s32.totalorder %s1829_s28, 63  ;;  %2225 = vmatprep.subr.mxu1 %v314_v0  ;;  %v681_v15 = vld [vmem:[%s3419_s3 + $0x28] sm:$0xff]  ;;  %v680_v17 = vld [vmem:[%s3419_s3 + $0x20] sm:$0xff]  ;;  %v679_v37 = vld [vmem:[%s3419_s3 + $0x18] sm:$0xff] }
   0xd   : > { %2048 = vmatpush3.msra.mxu0 %v314_v0  ;;  %2226 = vmatpush3.msra.mxu1 %v314_v0  ;;  %v678_v38 = vld [vmem:[%s3419_s3 + $0x10] sm:$0xff]  ;;  %v677_v39 = vld [vmem:[%s3419_s3 + $0x8] sm:$0xff]  ;;  %v676_v40 = vld [vmem:[%s3419_s3] sm:$0xff] }
   0xe   : > { %s3470_s28 = smov (!%p271_p3, %s1829_s28), 63  ;;  %2097 = vmatprep.subr.mxu1 %v683_v1  ;;  %v1052_v41 = vld [vmem:[%s3421_s5 + $0x38] sm:$0xff]  ;;  %v1051_v42 = vld [vmem:[%s3421_s5 + $0x30] sm:$0xff]  ;;  %v1050_v43 = vld [vmem:[%s3421_s5 + $0x28] sm:$0xff] }
   0xf   : > { %s1830_s8 = sshll.u32 %s3470_s28, 3  ;;  %2161 = vmatprep.subr.mxu0 %v1052_v41  ;;  %v1049_v44 = vld [vmem:[%s3421_s5 + $0x20] sm:$0xff] }
  0x10   : > { %s2561_s11 = scalar_lea.vmem %s3416_s0, %s1830_s8  ;;  %v2663_v45 = vld [vmem:[%s3418_s2] ss:$0 sm:$0xff]  ;;  %s3251_s10 = scalar_lea.vmem %s3423_s7, %s1830_s8 }
  0x11   : > { %v282_v2 = vld [vmem:[%s2561_s11] sm:$0xff]  ;;  %v283_v3 = vld [vmem:[%s2561_s11 + $0x8] sm:$0xff]  ;;  %v284_v4 = vld [vmem:[%s2561_s11 + $0x10] sm:$0xff] }
  0x12   : > { %2049 = vmatprep.mubr.msk.f32.mxu0 %vm322_vm0, %v282_v2  ;;  %v285_v5 = vld [vmem:[%s2561_s11 + $0x18] sm:$0xff]  ;;  %v286_v6 = vld [vmem:[%s2561_s11 + $0x20] sm:$0xff]  ;;  %v299_v8 = vld [vmem:[%s2561_s11 + $0x88] sm:$0xff] }
  0x13   : > { %2050 = vmatmul.mubr.msk.f32.vlgmr.msra.gmra.mxu0 %vm322_vm0, %v283_v3  ;;  %v298_v7 = vld [vmem:[%s2561_s11 + $0x80] sm:$0xff]  ;;  %v300_v9 = vld [vmem:[%s2561_s11 + $0x90] sm:$0xff]  ;;  %v287_v11 = vld [vmem:[%s2561_s11 + $0x28] sm:$0xff] }
  0x14   : > { %2052 = vmatprep.mubr.msk.f32.mxu0 %vm322_vm0, %v284_v4  ;;  %2073 = vmatprep.mubr.msk.f32.mxu1 %vm322_vm0, %v298_v7  ;;  %v288_v12 = vld [vmem:[%s2561_s11 + $0x30] sm:$0xff]  ;;  %v301_v13 = vld [vmem:[%s2561_s11 + $0x98] sm:$0xff]  ;;  %v302_v14 = vld [vmem:[%s2561_s11 + $0xa0] sm:$0xff] }
  0x15   : > { %2074 = vmatmul.mubr.msk.f32.vlgmr.msra.gmra.mxu1 %vm322_vm0, %v299_v8  ;;  %v289_v16 = vld [vmem:[%s2561_s11 + $0x38] sm:$0xff]  ;;  %v290_v18 = vld [vmem:[%s2561_s11 + $0x40] sm:$0xff]  ;;  %v303_v19 = vld [vmem:[%s2561_s11 + $0xa8] sm:$0xff]  ;;  %2162 = vmatpush3.msra.mxu0 %v1052_v41 }
  0x16   : > { %2076 = vmatprep.mubr.msk.f32.mxu1 %vm322_vm0, %v300_v9  ;;  %2098 = vmatpush3.msra.mxu1 %v683_v1  ;;  %v304_v20 = vld [vmem:[%s2561_s11 + $0xb0] sm:$0xff]  ;;  %v291_v21 = vld [vmem:[%s2561_s11 + $0x48] sm:$0xff]  ;;  %v305_v23 = vld [vmem:[%s2561_s11 + $0xb8] sm:$0xff] }
  0x17   : > { %2053 = vmatmul.mubr.msk.f32.gmra.mxu0 %vm322_vm0, %v285_v5  ;;  %2099 = vmatprep.subr.mxu1 %v682_v10  ;;  %v292_v22 = vld [vmem:[%s2561_s11 + $0x50] sm:$0xff]  ;;  %v306_v24 = vld [vmem:[%s2561_s11 + $0xc0] sm:$0xff]  ;;  %v293_v25 = vld [vmem:[%s2561_s11 + $0x58] sm:$0xff] }
  0x18   : > { %2055 = vmatprep.mubr.msk.f32.mxu0 %vm322_vm0, %v286_v6  ;;  %2100 = vmatpush3.msra.mxu1 %v682_v10  ;;  %v294_v26 = vld [vmem:[%s2561_s11 + $0x60] sm:$0xff]  ;;  %v307_v27 = vld [vmem:[%s2561_s11 + $0xc8] sm:$0xff]  ;;  %v308_v28 = vld [vmem:[%s2561_s11 + $0xd0] sm:$0xff] }
  0x19   : > { %2077 = vmatmul.mubr.msk.f32.gmra.mxu1 %vm322_vm0, %v301_v13  ;;  %2101 = vmatprep.subr.mxu1 %v681_v15  ;;  %v295_v29 = vld [vmem:[%s2561_s11 + $0x68] sm:$0xff]  ;;  %v296_v30 = vld [vmem:[%s2561_s11 + $0x70] sm:$0xff]  ;;  %v309_v31 = vld [vmem:[%s2561_s11 + $0xd8] sm:$0xff] }
  0x1a   : > { %2079 = vmatprep.mubr.msk.f32.mxu1 %vm322_vm0, %v302_v14  ;;  %2102 = vmatpush3.msra.mxu1 %v681_v15  ;;  %v310_v32 = vld [vmem:[%s2561_s11 + $0xe0] sm:$0xff]  ;;  %v297_v33 = vld [vmem:[%s2561_s11 + $0x78] sm:$0xff]  ;;  %v311_v34 = vld [vmem:[%s2561_s11 + $0xe8] sm:$0xff] }
  0x1b   : > { %2056 = vmatmul.mubr.msk.f32.gmra.mxu0 %vm322_vm0, %v287_v11  ;;  %2103 = vmatprep.subr.mxu1 %v680_v17  ;;  %v312_v35 = vld [vmem:[%s2561_s11 + $0xf0] sm:$0xff]  ;;  %v313_v36 = vld [vmem:[%s2561_s11 + $0xf8] sm:$0xff] }
  0x1c   : > { %2058 = vmatprep.mubr.msk.f32.mxu0 %vm322_vm0, %v288_v12  ;;  %2104 = vmatpush3.msra.mxu1 %v680_v17 }
  0x1d   : > { %2080 = vmatmul.mubr.msk.f32.gmra.mxu1 %vm322_vm0, %v303_v19  ;;  %2105 = vmatprep.subr.mxu1 %v679_v37 }
  0x1e   : > { %2082 = vmatprep.mubr.msk.f32.mxu1 %vm322_vm0, %v304_v20  ;;  %2106 = vmatpush3.msra.mxu1 %v679_v37 }
  0x1f   : > { %2059 = vmatmul.mubr.msk.f32.gmra.mxu0 %vm322_vm0, %v289_v16  ;;  %2107 = vmatprep.subr.mxu1 %v678_v38 }
  0x20   : > { %2061 = vmatprep.mubr.msk.f32.mxu0 %vm322_vm0, %v290_v18  ;;  %2108 = vmatpush3.msra.mxu1 %v678_v38 }
  0x21   : > { %2083 = vmatmul.mubr.msk.f32.gmra.mxu1 %vm322_vm0, %v305_v23  ;;  %2109 = vmatprep.subr.mxu1 %v677_v39 }
  0x22   : > { %2085 = vmatprep.mubr.msk.f32.mxu1 %vm322_vm0, %v306_v24  ;;  %2110 = vmatpush3.msra.mxu1 %v677_v39 }
  0x23   : > { %2062 = vmatmul.mubr.msk.f32.gmra.mxu0 %vm322_vm0, %v291_v21  ;;  %2111 = vmatprep.subr.mxu1 %v676_v40 }
  0x24   : > { %2064 = vmatprep.mubr.msk.f32.mxu0 %vm322_vm0, %v292_v22  ;;  %2112 = vmatpush3.msra.mxu1 %v676_v40 }
  0x25   : > { %2086 = vmatmul.mubr.msk.f32.gmra.mxu1 %vm322_vm0, %v307_v27  ;;  %2163 = vmatprep.subr.mxu0 %v1051_v42 }
  0x26   : > { %2088 = vmatprep.mubr.msk.f32.mxu1 %vm322_vm0, %v308_v28  ;;  %2164 = vmatpush3.msra.mxu0 %v1051_v42 }
  0x27   : > { %2065 = vmatmul.mubr.msk.f32.gmra.mxu0 %vm322_vm0, %v293_v25  ;;  %2165 = vmatprep.subr.mxu0 %v1050_v43 }
  0x28   : > { %2067 = vmatprep.mubr.msk.f32.mxu0 %vm322_vm0, %v294_v26  ;;  %2166 = vmatpush3.msra.mxu0 %v1050_v43 }
  0x29   : > { %2089 = vmatmul.mubr.msk.f32.gmra.mxu1 %vm322_vm0, %v309_v31  ;;  %2167 = vmatprep.subr.mxu0 %v1049_v44 }
  0x2a   : > { %2091 = vmatprep.mubr.msk.f32.mxu1 %vm322_vm0, %v310_v32  ;;  %2168 = vmatpush3.msra.mxu0 %v1049_v44 }
  0x2b   : > { %2068 = vmatmul.mubr.msk.f32.gmra.mxu0 %vm322_vm0, %v295_v29 }
  0x2c   : > { %2070 = vmatprep.mubr.msk.f32.mxu0 %vm322_vm0, %v296_v30 }
  0x2d   : > { %2092 = vmatmul.mubr.msk.f32.gmra.mxu1 %vm322_vm0, %v311_v34 }
  0x2e   : > { %2094 = vmatprep.mubr.msk.f32.mxu1 %vm322_vm0, %v312_v35 }
  0x2f   : > { %2071 = vmatmul.mubr.msk.f32.gmra.mxu0 %vm322_vm0, %v297_v33 }
  0x31   : > { %2095 = vmatmul.mubr.msk.f32.gmra.mxu1 %vm322_vm0, %v313_v36 }
  0xd3   : > { %v2051_v46 = vpop.f32.mrf.mxu0 }
  0xd4   : > { %v491_v47 = vadd.f32 %v2051_v46, %v2663_v45 }
  0xd5   : > { %v485_v48 = vpop.f32.mrf.mxu0  ;;  %v2667_v51 = vpop.f32.mrf.mxu1 }
  0xd6   : > { %v486_v49 = vadd.f32 %v2663_v45, %v485_v48  ;;  %v571_v33 = vadd.f32 %v2667_v51, %v2663_v45 }
  0xd7   : > { %v2054_v50 = vpop.f32.mrf.mxu0  ;;  %v565_v55 = vpop.f32.mrf.mxu1 }
  0xd8   : > { %2235 = vtanh.f32 %v486_v49  ;;  %v501_v52 = vadd.f32 %v2054_v50, %v2663_v45  ;;  %v566_v25 = vadd.f32 %v2663_v45, %v565_v55 }
  0xd9   : > { %2237 = vtanh.f32 %v491_v47  ;;  %v495_v53 = vpop.f32.mrf.mxu0  ;;  %v2672_v58 = vpop.f32.mrf.mxu1 }
  0xda   : > { %v496_v54 = vadd.f32 %v2663_v45, %v495_v53  ;;  %v581_v38 = vadd.f32 %v2672_v58, %v2663_v45 }
  0xdb   : > { %v2057_v56 = vpop.f32.mrf.mxu0  ;;  %v575_v61 = vpop.f32.mrf.mxu1 }
  0xdc   : > { %2239 = vtanh.f32 %v496_v54  ;;  %v511_v57 = vadd.f32 %v2057_v56, %v2663_v45  ;;  %v576_v35 = vadd.f32 %v2663_v45, %v575_v61 }
  0xdd   : > { %2241 = vtanh.f32 %v501_v52  ;;  %v505_v59 = vpop.f32.mrf.mxu0  ;;  %v2676_v0 = vpop.f32.mrf.mxu1 }
  0xde   : > { %v506_v60 = vadd.f32 %v2663_v45, %v505_v59  ;;  %2243 = vtanh.f32 %v511_v57  ;;  %v591_v43 = vadd.f32 %v2676_v0, %v2663_v45 }
  0xdf   : > { %v2060_v62 = vpop.f32.mrf.mxu0  ;;  %v585_v3 = vpop.f32.mrf.mxu1 }
  0xe0   : > { %2245 = vtanh.f32 %v506_v60  ;;  %v521_v63 = vadd.f32 %v2060_v62, %v2663_v45  ;;  %v586_v40 = vadd.f32 %v2663_v45, %v585_v3 }
  0xe1   : > { %v515_v1 = vpop.f32.mrf.mxu0  ;;  %v2680_v8 = vpop.f32.mrf.mxu1 }
  0xe2   : > { %v516_v2 = vadd.f32 %v2663_v45, %v515_v1  ;;  %2247 = vtanh.f32 %v521_v63  ;;  %v601_v50 = vadd.f32 %v2680_v8, %v2663_v45 }
  0xe3   : > { %v2063_v4 = vpop.f32.mrf.mxu0  ;;  %v595_v15 = vpop.f32.mrf.mxu1 }
  0xe4   : > { %2249 = vtanh.f32 %v516_v2  ;;  %v531_v5 = vadd.f32 %v2063_v4, %v2663_v45  ;;  %v596_v46 = vadd.f32 %v2663_v45, %v595_v15  ;;  %v1047_v15 = vld [vmem:[%s3421_s5 + $0x10] sm:$0xff] }
  0xe5   : > { %v2236_v6 = vpop.eup %2235  ;;  %v525_v7 = vpop.f32.mrf.mxu0 }
  0xe6   : > { %v2238_v9 = vpop.eup %2237  ;;  %v526_v10 = vadd.f32 %v2663_v45, %v525_v7  ;;  %2113 = vmatprep.mubr.msk.f32.mxu1 %vm691_vm1, %v2236_v6  ;;  %2251 = vtanh.f32 %v531_v5  ;;  %v2087_v23 = vpop.f32.mrf.mxu1 }
  0xe7   : > { %v2066_v11 = vpop.f32.mrf.mxu0  ;;  %2114 = vmatmul.mubr.msk.f32.vlgmr.msra.gmra.mxu1 %vm691_vm1, %v2238_v9  ;;  %v611_v55 = vadd.f32 %v2087_v23, %v2663_v45 }
  0xe8   : > { %2253 = vtanh.f32 %v526_v10  ;;  %v541_v12 = vadd.f32 %v2066_v11, %v2663_v45  ;;  %v605_v31 = vpop.f32.mrf.mxu1 }
  0xe9   : > { %v2240_v13 = vpop.eup %2239  ;;  %v535_v14 = vpop.f32.mrf.mxu0  ;;  %v606_v52 = vadd.f32 %v2663_v45, %v605_v31 }
  0xea   : > { %v2242_v16 = vpop.eup %2241  ;;  %v536_v17 = vadd.f32 %v2663_v45, %v535_v14  ;;  %2116 = vmatprep.mubr.msk.f32.mxu1 %vm691_vm1, %v2240_v13  ;;  %2255 = vtanh.f32 %v541_v12  ;;  %v2090_v37 = vpop.f32.mrf.mxu1  ;;  %v1048_v14 = vld [vmem:[%s3421_s5 + $0x18] sm:$0xff] }
  0xeb   : > { %v2069_v18 = vpop.f32.mrf.mxu0  ;;  %2117 = vmatmul.mubr.msk.f32.gmra.mxu1 %vm691_vm1, %v2242_v16  ;;  %v2244_v19 = vpop.eup %2243  ;;  %v621_v60 = vadd.f32 %v2090_v37, %v2663_v45  ;;  %2169 = vmatprep.subr.mxu0 %v1048_v14  ;;  %v1046_v16 = vld [vmem:[%s3421_s5 + $0x8] sm:$0xff] }
  0xec   : > { %2257 = vtanh.f32 %v536_v17  ;;  %v551_v20 = vadd.f32 %v2069_v18, %v2663_v45  ;;  %v615_v42 = vpop.f32.mrf.mxu1  ;;  %2170 = vmatpush3.msra.mxu0 %v1048_v14  ;;  %v1045_v17 = vld [vmem:[%s3421_s5] sm:$0xff] }
  0xed   : > { %v2246_v21 = vpop.eup %2245  ;;  %v545_v22 = vpop.f32.mrf.mxu0  ;;  %v616_v57 = vadd.f32 %v2663_v45, %v615_v42  ;;  %2171 = vmatprep.subr.mxu0 %v1047_v15  ;;  %v2756_v18 = vld [vmem:[%s3420_s4] ss:$0 sm:$0xff] }
  0xee   : > { %v546_v24 = vadd.f32 %v2663_v45, %v545_v22  ;;  %2119 = vmatprep.mubr.msk.f32.mxu1 %vm691_vm1, %v2246_v21  ;;  %2259 = vtanh.f32 %v551_v20  ;;  %v2093_v48 = vpop.f32.mrf.mxu1  ;;  %2172 = vmatpush3.msra.mxu0 %v1047_v15 }
  0xef   : > { %v2072_v26 = vpop.f32.mrf.mxu0  ;;  %2120 = vmatmul.mubr.msk.f32.gmra.mxu1 %vm691_vm1, %v2244_v19  ;;  %v2248_v27 = vpop.eup %2247  ;;  %v631_v1 = vadd.f32 %v2093_v48, %v2663_v45  ;;  %2173 = vmatprep.subr.mxu0 %v1046_v16 }
  0xf0   : > { %2261 = vtanh.f32 %v546_v24  ;;  %v561_v28 = vadd.f32 %v2072_v26, %v2663_v45  ;;  %v625_v54 = vpop.f32.mrf.mxu1  ;;  %2174 = vmatpush3.msra.mxu0 %v1046_v16 }
  0xf1   : > { %v2250_v29 = vpop.eup %2249  ;;  %v555_v30 = vpop.f32.mrf.mxu0  ;;  %2263 = vtanh.f32 %v566_v25  ;;  %v626_v62 = vadd.f32 %v2663_v45, %v625_v54  ;;  %2175 = vmatprep.subr.mxu0 %v1045_v17 }
  0xf2   : > { %v556_v32 = vadd.f32 %v2663_v45, %v555_v30  ;;  %2122 = vmatprep.mubr.msk.f32.mxu1 %vm691_vm1, %v2250_v29  ;;  %2265 = vtanh.f32 %v561_v28  ;;  %v2096_v59 = vpop.f32.mrf.mxu1  ;;  %2176 = vmatpush3.msra.mxu0 %v1045_v17 }
  0xf3   : > { %2123 = vmatmul.mubr.msk.f32.gmra.mxu1 %vm691_vm1, %v2248_v27  ;;  %v2252_v34 = vpop.eup %2251  ;;  %v641_v5 = vadd.f32 %v2096_v59, %v2663_v45 }
  0xf4   : > { %2267 = vtanh.f32 %v556_v32  ;;  %v635_v0 = vpop.f32.mrf.mxu1 }
  0xf5   : > { %v2254_v36 = vpop.eup %2253  ;;  %2269 = vtanh.f32 %v571_v33  ;;  %v636_v3 = vadd.f32 %v2663_v45, %v635_v0 }
  0xf6   : > { %2125 = vmatprep.mubr.msk.f32.mxu1 %vm691_vm1, %v2254_v36  ;;  %2271 = vtanh.f32 %v576_v35 }
  0xf7   : > { %2126 = vmatmul.mubr.msk.f32.gmra.mxu1 %vm691_vm1, %v2252_v34  ;;  %v2256_v39 = vpop.eup %2255  ;;  %2273 = vtanh.f32 %v581_v38 }
  0xf8   : > { %2275 = vtanh.f32 %v586_v40 }
  0xf9   : > { %v2258_v41 = vpop.eup %2257  ;;  %2277 = vtanh.f32 %v591_v43 }
  0xfa   : > { %2128 = vmatprep.mubr.msk.f32.mxu1 %vm691_vm1, %v2258_v41  ;;  %2279 = vtanh.f32 %v596_v46 }
  0xfb   : > { %2129 = vmatmul.mubr.msk.f32.gmra.mxu1 %vm691_vm1, %v2256_v39  ;;  %v2260_v44 = vpop.eup %2259  ;;  %2281 = vtanh.f32 %v601_v50 }
  0xfc   : > { %2283 = vtanh.f32 %v606_v52 }
  0xfd   : > { %v2262_v47 = vpop.eup %2261  ;;  %2285 = vtanh.f32 %v611_v55 }
  0xfe   : > { %2131 = vmatprep.mubr.msk.f32.mxu1 %vm691_vm1, %v2262_v47  ;;  %v2264_v49 = vpop.eup %2263  ;;  %2287 = vtanh.f32 %v616_v57 }
  0xff   : > { %2132 = vmatmul.mubr.msk.f32.gmra.mxu1 %vm691_vm1, %v2260_v44  ;;  %v2266_v51 = vpop.eup %2265  ;;  %2289 = vtanh.f32 %v621_v60 }
 0x100   : > { %2291 = vtanh.f32 %v626_v62 }
 0x101   : > { %v2268_v53 = vpop.eup %2267  ;;  %2293 = vtanh.f32 %v631_v1 }
 0x102   : > { %2134 = vmatprep.mubr.msk.f32.mxu1 %vm691_vm1, %v2268_v53  ;;  %v2270_v56 = vpop.eup %2269  ;;  %2295 = vtanh.f32 %v636_v3 }
 0x103   : > { %2135 = vmatmul.mubr.msk.f32.gmra.mxu1 %vm691_vm1, %v2266_v51  ;;  %v2272_v58 = vpop.eup %2271  ;;  %2297 = vtanh.f32 %v641_v5 }
 0x104   : > { %2137 = vmatprep.mubr.msk.f32.mxu1 %vm691_vm1, %v2264_v49  ;;  %v2274_v61 = vpop.eup %2273 }
 0x105   : > { %v2276_v63 = vpop.eup %2275 }
 0x106   : > { %v2278_v2 = vpop.eup %2277 }
 0x107   : > { %2138 = vmatmul.mubr.msk.f32.gmra.mxu1 %vm691_vm1, %v2270_v56  ;;  %v2280_v4 = vpop.eup %2279 }
 0x108   : > { %2140 = vmatprep.mubr.msk.f32.mxu1 %vm691_vm1, %v2272_v58  ;;  %v2282_v6 = vpop.eup %2281 }
 0x109   : > { %v2284_v7 = vpop.eup %2283 }
 0x10a   : > { %v2286_v8 = vpop.eup %2285 }
 0x10b   : > { %2141 = vmatmul.mubr.msk.f32.gmra.mxu1 %vm691_vm1, %v2274_v61  ;;  %v2288_v9 = vpop.eup %2287 }
 0x10c   : > { %2143 = vmatprep.mubr.msk.f32.mxu1 %vm691_vm1, %v2276_v63  ;;  %v2290_v10 = vpop.eup %2289 }
 0x10d   : > { %v2292_v45 = vpop.eup %2291 }
 0x10e   : > { %v2294_v11 = vpop.eup %2293 }
 0x10f   : > { %2144 = vmatmul.mubr.msk.f32.gmra.mxu1 %vm691_vm1, %v2278_v2  ;;  %v2296_v12 = vpop.eup %2295 }
 0x110   : > { %2146 = vmatprep.mubr.msk.f32.mxu1 %vm691_vm1, %v2280_v4  ;;  %v2298_v13 = vpop.eup %2297 }
 0x113   : > { %2147 = vmatmul.mubr.msk.f32.gmra.mxu1 %vm691_vm1, %v2282_v6 }
 0x114   : > { %2149 = vmatprep.mubr.msk.f32.mxu1 %vm691_vm1, %v2284_v7 }
 0x117   : > { %2150 = vmatmul.mubr.msk.f32.gmra.mxu1 %vm691_vm1, %v2286_v8 }
 0x118   : > { %2152 = vmatprep.mubr.msk.f32.mxu1 %vm691_vm1, %v2288_v9 }
 0x11b   : > { %2153 = vmatmul.mubr.msk.f32.gmra.mxu1 %vm691_vm1, %v2290_v10 }
 0x11c   : > { %2155 = vmatprep.mubr.msk.f32.mxu1 %vm691_vm1, %v2292_v45 }
 0x11f   : > { %2156 = vmatmul.mubr.msk.f32.gmra.mxu1 %vm691_vm1, %v2294_v11 }
 0x120   : > { %2158 = vmatprep.mubr.msk.f32.mxu1 %vm691_vm1, %v2296_v12 }
 0x123   : > { %2159 = vmatmul.mubr.msk.f32.gmra.mxu1 %vm691_vm1, %v2298_v13 }
 0x1a7   : > { %v2115_v19 = vpop.f32.mrf.mxu1 }
 0x1a8   : > { %v860_v20 = vadd.f32 %v2115_v19, %v2756_v18 }
 0x1a9   : > { %v854_v21 = vpop.f32.mrf.mxu1 }
 0x1aa   : > { %v855_v22 = vadd.f32 %v2756_v18, %v854_v21 }
 0x1ab   : > { %v2118_v23 = vpop.f32.mrf.mxu1 }
 0x1ac   : > { %2299 = vtanh.f32 %v855_v22  ;;  %v870_v24 = vadd.f32 %v2118_v23, %v2756_v18 }
 0x1ad   : > { %2301 = vtanh.f32 %v860_v20  ;;  %v864_v25 = vpop.f32.mrf.mxu1 }
 0x1ae   : > { %v865_v26 = vadd.f32 %v2756_v18, %v864_v25 }
 0x1af   : > { %v2121_v27 = vpop.f32.mrf.mxu1 }
 0x1b0   : > { %2303 = vtanh.f32 %v865_v26  ;;  %v880_v28 = vadd.f32 %v2121_v27, %v2756_v18 }
 0x1b1   : > { %2305 = vtanh.f32 %v870_v24  ;;  %v874_v29 = vpop.f32.mrf.mxu1 }
 0x1b2   : > { %v875_v30 = vadd.f32 %v2756_v18, %v874_v29 }
 0x1b3   : > { %v2124_v31 = vpop.f32.mrf.mxu1 }
 0x1b4   : > { %2307 = vtanh.f32 %v875_v30  ;;  %v890_v32 = vadd.f32 %v2124_v31, %v2756_v18 }
 0x1b5   : > { %2309 = vtanh.f32 %v880_v28  ;;  %v884_v33 = vpop.f32.mrf.mxu1 }
 0x1b6   : > { %v885_v34 = vadd.f32 %v2756_v18, %v884_v33 }
 0x1b7   : > { %v2127_v35 = vpop.f32.mrf.mxu1 }
 0x1b8   : > { %2311 = vtanh.f32 %v885_v34  ;;  %v900_v37 = vadd.f32 %v2127_v35, %v2756_v18 }
 0x1b9   : > { %v2300_v36 = vpop.eup %2299  ;;  %2313 = vtanh.f32 %v890_v32  ;;  %v894_v38 = vpop.f32.mrf.mxu1 }
 0x1ba   : > { %v2302_v39 = vpop.eup %2301  ;;  %v895_v40 = vadd.f32 %v2756_v18, %v894_v38  ;;  %2177 = vmatprep.mubr.msk.f32.mxu0 %vm691_vm1, %v2300_v36 }
 0x1bb   : > { %v2130_v41 = vpop.f32.mrf.mxu1  ;;  %2178 = vmatmul.mubr.msk.f32.vlgmr.msra.gmra.mxu0 %vm691_vm1, %v2302_v39 }
 0x1bc   : > { %2315 = vtanh.f32 %v895_v40  ;;  %v910_v43 = vadd.f32 %v2130_v41, %v2756_v18 }
 0x1bd   : > { %v2304_v42 = vpop.eup %2303  ;;  %2317 = vtanh.f32 %v900_v37  ;;  %v904_v44 = vpop.f32.mrf.mxu1 }
 0x1be   : > { %v2306_v46 = vpop.eup %2305  ;;  %v905_v47 = vadd.f32 %v2756_v18, %v904_v44  ;;  %2180 = vmatprep.mubr.msk.f32.mxu0 %vm691_vm1, %v2304_v42 }
 0x1bf   : > { %v2133_v48 = vpop.f32.mrf.mxu1  ;;  %2181 = vmatmul.mubr.msk.f32.gmra.mxu0 %vm691_vm1, %v2306_v46 }
 0x1c0   : > { %2319 = vtanh.f32 %v905_v47  ;;  %v920_v50 = vadd.f32 %v2133_v48, %v2756_v18 }
 0x1c1   : > { %v2308_v49 = vpop.eup %2307  ;;  %2321 = vtanh.f32 %v910_v43  ;;  %v914_v51 = vpop.f32.mrf.mxu1 }
 0x1c2   : > { %v2310_v52 = vpop.eup %2309  ;;  %v915_v53 = vadd.f32 %v2756_v18, %v914_v51  ;;  %2183 = vmatprep.mubr.msk.f32.mxu0 %vm691_vm1, %v2308_v49 }
 0x1c3   : > { %v2136_v54 = vpop.f32.mrf.mxu1  ;;  %2184 = vmatmul.mubr.msk.f32.gmra.mxu0 %vm691_vm1, %v2310_v52  ;;  %v1381_v52 = vlaneseq }
 0x1c4   : > { %2323 = vtanh.f32 %v915_v53  ;;  %v930_v56 = vadd.f32 %v2136_v54, %v2756_v18  ;;  %v2827_v54 = vld [vmem:[%s3422_s6] ss:$0 sm:$0xff] }
 0x1c5   : > { %v2312_v55 = vpop.eup %2311  ;;  %2325 = vtanh.f32 %v920_v50  ;;  %v924_v57 = vpop.f32.mrf.mxu1  ;;  %v2822_v53 = vand.u32 127, %v1381_v52 }
 0x1c6   : > { %v2314_v58 = vpop.eup %2313  ;;  %v925_v59 = vadd.f32 %v2756_v18, %v924_v57  ;;  %2186 = vmatprep.mubr.msk.f32.mxu0 %vm691_vm1, %v2312_v55 }
 0x1c7   : > { %v2139_v60 = vpop.f32.mrf.mxu1  ;;  %2187 = vmatmul.mubr.msk.f32.gmra.mxu0 %vm691_vm1, %v2314_v58  ;;  %vm1383_vm2 = vcmp.lt.s32.totalorder %v2822_v53, 4 }
 0x1c8   : > { %2327 = vtanh.f32 %v925_v59  ;;  %v940_v62 = vadd.f32 %v2139_v60, %v2756_v18 }
 0x1c9   : > { %v2316_v61 = vpop.eup %2315  ;;  %2329 = vtanh.f32 %v930_v56  ;;  %v934_v63 = vpop.f32.mrf.mxu1 }
 0x1ca   : > { %v2318_v0 = vpop.eup %2317  ;;  %v935_v1 = vadd.f32 %v2756_v18, %v934_v63  ;;  %2189 = vmatprep.mubr.msk.f32.mxu0 %vm691_vm1, %v2316_v61 }
 0x1cb   : > { %v2142_v2 = vpop.f32.mrf.mxu1  ;;  %2190 = vmatmul.mubr.msk.f32.gmra.mxu0 %vm691_vm1, %v2318_v0 }
 0x1cc   : > { %2331 = vtanh.f32 %v935_v1  ;;  %v950_v4 = vadd.f32 %v2142_v2, %v2756_v18 }
 0x1cd   : > { %v2320_v3 = vpop.eup %2319  ;;  %2333 = vtanh.f32 %v940_v62  ;;  %v944_v5 = vpop.f32.mrf.mxu1 }
 0x1ce   : > { %v2322_v6 = vpop.eup %2321  ;;  %v945_v7 = vadd.f32 %v2756_v18, %v944_v5  ;;  %2192 = vmatprep.mubr.msk.f32.mxu0 %vm691_vm1, %v2320_v3 }
 0x1cf   : > { %v2145_v8 = vpop.f32.mrf.mxu1  ;;  %2193 = vmatmul.mubr.msk.f32.gmra.mxu0 %vm691_vm1, %v2322_v6 }
 0x1d0   : > { %2335 = vtanh.f32 %v945_v7  ;;  %v960_v10 = vadd.f32 %v2145_v8, %v2756_v18 }
 0x1d1   : > { %v2324_v9 = vpop.eup %2323  ;;  %2337 = vtanh.f32 %v950_v4  ;;  %v954_v45 = vpop.f32.mrf.mxu1 }
 0x1d2   : > { %v2326_v11 = vpop.eup %2325  ;;  %v955_v12 = vadd.f32 %v2756_v18, %v954_v45  ;;  %2195 = vmatprep.mubr.msk.f32.mxu0 %vm691_vm1, %v2324_v9 }
 0x1d3   : > { %v2148_v13 = vpop.f32.mrf.mxu1  ;;  %2196 = vmatmul.mubr.msk.f32.gmra.mxu0 %vm691_vm1, %v2326_v11 }
 0x1d4   : > { %2339 = vtanh.f32 %v955_v12  ;;  %v970_v15 = vadd.f32 %v2148_v13, %v2756_v18 }
 0x1d5   : > { %v2328_v14 = vpop.eup %2327  ;;  %2341 = vtanh.f32 %v960_v10  ;;  %v964_v16 = vpop.f32.mrf.mxu1 }
 0x1d6   : > { %v2330_v17 = vpop.eup %2329  ;;  %v965_v19 = vadd.f32 %v2756_v18, %v964_v16  ;;  %2198 = vmatprep.mubr.msk.f32.mxu0 %vm691_vm1, %v2328_v14 }
 0x1d7   : > { %v2151_v20 = vpop.f32.mrf.mxu1  ;;  %2199 = vmatmul.mubr.msk.f32.gmra.mxu0 %vm691_vm1, %v2330_v17 }
 0x1d8   : > { %2343 = vtanh.f32 %v965_v19  ;;  %v980_v22 = vadd.f32 %v2151_v20, %v2756_v18 }
 0x1d9   : > { %v2332_v21 = vpop.eup %2331  ;;  %2345 = vtanh.f32 %v970_v15  ;;  %v974_v23 = vpop.f32.mrf.mxu1 }
 0x1da   : > { %v2334_v24 = vpop.eup %2333  ;;  %v975_v25 = vadd.f32 %v2756_v18, %v974_v23  ;;  %2201 = vmatprep.mubr.msk.f32.mxu0 %vm691_vm1, %v2332_v21 }
 0x1db   : > { %v2154_v26 = vpop.f32.mrf.mxu1  ;;  %2202 = vmatmul.mubr.msk.f32.gmra.mxu0 %vm691_vm1, %v2334_v24 }
 0x1dc   : > { %2347 = vtanh.f32 %v975_v25  ;;  %v990_v28 = vadd.f32 %v2154_v26, %v2756_v18 }
 0x1dd   : > { %v2336_v27 = vpop.eup %2335  ;;  %2349 = vtanh.f32 %v980_v22  ;;  %v984_v29 = vpop.f32.mrf.mxu1 }
 0x1de   : > { %v2338_v30 = vpop.eup %2337  ;;  %v985_v31 = vadd.f32 %v2756_v18, %v984_v29  ;;  %2204 = vmatprep.mubr.msk.f32.mxu0 %vm691_vm1, %v2336_v27 }
 0x1df   : > { %v2157_v32 = vpop.f32.mrf.mxu1  ;;  %2205 = vmatmul.mubr.msk.f32.gmra.mxu0 %vm691_vm1, %v2338_v30 }
 0x1e0   : > { %2351 = vtanh.f32 %v985_v31  ;;  %v1000_v34 = vadd.f32 %v2157_v32, %v2756_v18 }
 0x1e1   : > { %v2340_v33 = vpop.eup %2339  ;;  %2353 = vtanh.f32 %v990_v28  ;;  %v994_v35 = vpop.f32.mrf.mxu1 }
 0x1e2   : > { %v2342_v36 = vpop.eup %2341  ;;  %v995_v37 = vadd.f32 %v2756_v18, %v994_v35  ;;  %2207 = vmatprep.mubr.msk.f32.mxu0 %vm691_vm1, %v2340_v33 }
 0x1e3   : > { %v2160_v38 = vpop.f32.mrf.mxu1  ;;  %2208 = vmatmul.mubr.msk.f32.gmra.mxu0 %vm691_vm1, %v2342_v36 }
 0x1e4   : > { %2355 = vtanh.f32 %v995_v37  ;;  %v1010_v40 = vadd.f32 %v2160_v38, %v2756_v18 }
 0x1e5   : > { %v2344_v39 = vpop.eup %2343  ;;  %2357 = vtanh.f32 %v1000_v34  ;;  %v1004_v41 = vpop.f32.mrf.mxu1 }
 0x1e6   : > { %v2346_v42 = vpop.eup %2345  ;;  %v1005_v43 = vadd.f32 %v2756_v18, %v1004_v41  ;;  %2210 = vmatprep.mubr.msk.f32.mxu0 %vm691_vm1, %v2344_v39 }
 0x1e7   : > { %2211 = vmatmul.mubr.msk.f32.gmra.mxu0 %vm691_vm1, %v2346_v42 }
 0x1e8   : > { %2359 = vtanh.f32 %v1005_v43 }
 0x1e9   : > { %v2348_v44 = vpop.eup %2347  ;;  %2361 = vtanh.f32 %v1010_v40 }
 0x1ea   : > { %v2350_v46 = vpop.eup %2349  ;;  %2213 = vmatprep.mubr.msk.f32.mxu0 %vm691_vm1, %v2348_v44 }
 0x1eb   : > { %2214 = vmatmul.mubr.msk.f32.gmra.mxu0 %vm691_vm1, %v2350_v46 }
 0x1ed   : > { %v2352_v47 = vpop.eup %2351 }
 0x1ee   : > { %v2354_v48 = vpop.eup %2353  ;;  %2216 = vmatprep.mubr.msk.f32.mxu0 %vm691_vm1, %v2352_v47 }
 0x1ef   : > { %2217 = vmatmul.mubr.msk.f32.gmra.mxu0 %vm691_vm1, %v2354_v48 }
 0x1f1   : > { %v2356_v49 = vpop.eup %2355 }
 0x1f2   : > { %v2358_v18 = vpop.eup %2357  ;;  %2219 = vmatprep.mubr.msk.f32.mxu0 %vm691_vm1, %v2356_v49 }
 0x1f3   : > { %2220 = vmatmul.mubr.msk.f32.gmra.mxu0 %vm691_vm1, %v2358_v18 }
 0x1f5   : > { %v2360_v50 = vpop.eup %2359 }
 0x1f6   : > { %v2362_v51 = vpop.eup %2361  ;;  %2222 = vmatprep.mubr.msk.f32.mxu0 %vm691_vm1, %v2360_v50 }
 0x1f7   : > { %2223 = vmatmul.mubr.msk.f32.gmra.mxu0 %vm691_vm1, %v2362_v51 }
 0x27b   : > { %v2179_v55 = vpop.f32.mrf.mxu0 }
 0x27c   : > { %v2831_v56 = vadd.f32 %v2179_v55, %v2827_v54 }
 0x27d   : > { %v1222_v57 = vpop.f32.mrf.mxu0 }
 0x27e   : > { %v2834_v58 = vadd.f32 %v2827_v54, %v1222_v57  ;;  %v2839_v59 = vsel %vm1383_vm2, %v2831_v56, -1e+30 }
 0x27f   : > { %1418 = vmax.xlane.f32.xlu0 %v2839_v59  ;;  %v2182_v60 = vpop.f32.mrf.mxu0 }
 0x280   : > { %v2843_v61 = vadd.f32 %v2182_v60, %v2827_v54  ;;  %v2856_v1 = vsel %vm1383_vm2, %v2834_v58, -1e+30 }
 0x281   : > { %v1232_v62 = vpop.f32.mrf.mxu0 }
 0x282   : > { %v2846_v63 = vadd.f32 %v2827_v54, %v1232_v62  ;;  %v2851_v0 = vsel %vm1383_vm2, %v2843_v61, -1e+30 }
 0x283   : > { %1422 = vmax.xlane.f32.xlu1 %v2851_v0  ;;  %v2185_v2 = vpop.f32.mrf.mxu0  ;;  %1416 = vmax.xlane.f32.xlu0 %v2856_v1 }
 0x284   : > { %v2861_v4 = vadd.f32 %v2185_v2, %v2827_v54  ;;  %v2869_v6 = vsel %vm1383_vm2, %v2846_v63, -1e+30 }
 0x285   : > { %v1242_v3 = vpop.f32.mrf.mxu0 }
 0x286   : > { %v2864_v5 = vadd.f32 %v2827_v54, %v1242_v3  ;;  %v2887_v11 = vsel %vm1383_vm2, %v2861_v4, -1e+30 }
 0x287   : > { %v2188_v7 = vpop.f32.mrf.mxu0  ;;  %1420 = vmax.xlane.f32.xlu1 %v2869_v6 }
 0x288   : > { %v2875_v8 = vsel %vm1383_vm2, %v2864_v5, -1e+30  ;;  %v2879_v10 = vadd.f32 %v2188_v7, %v2827_v54 }
 0x289   : > { %v1252_v9 = vpop.f32.mrf.mxu0  ;;  %1424 = vmax.xlane.f32.xlu0 %v2875_v8 }
 0x28a   : > { %v2882_v45 = vadd.f32 %v2827_v54, %v1252_v9  ;;  %v2905_v17 = vsel %vm1383_vm2, %v2879_v10, -1e+30 }
 0x28b   : > { %v2191_v12 = vpop.f32.mrf.mxu0  ;;  %1426 = vmax.xlane.f32.xlu1 %v2887_v11 }
 0x28c   : > { %v2893_v13 = vsel %vm1383_vm2, %v2882_v45, -1e+30  ;;  %v2897_v15 = vadd.f32 %v2191_v12, %v2827_v54 }
 0x28d   : > { %v1262_v14 = vpop.f32.mrf.mxu0  ;;  %1428 = vmax.xlane.f32.xlu0 %v2893_v13 }
 0x28e   : > { %v2900_v16 = vadd.f32 %v2827_v54, %v1262_v14  ;;  %v2923_v24 = vsel %vm1383_vm2, %v2897_v15, -1e+30 }
 0x28f   : > { %v2194_v19 = vpop.f32.mrf.mxu0  ;;  %1430 = vmax.xlane.f32.xlu1 %v2905_v17 }
 0x290   : > { %v2911_v20 = vsel %vm1383_vm2, %v2900_v16, -1e+30  ;;  %v2915_v22 = vadd.f32 %v2194_v19, %v2827_v54 }
 0x291   : > { %v1272_v21 = vpop.f32.mrf.mxu0  ;;  %1432 = vmax.xlane.f32.xlu0 %v2911_v20 }
 0x292   : > { %v2918_v23 = vadd.f32 %v2827_v54, %v1272_v21  ;;  %v2941_v30 = vsel %vm1383_vm2, %v2915_v22, -1e+30 }
 0x293   : > { %v2197_v25 = vpop.f32.mrf.mxu0  ;;  %1434 = vmax.xlane.f32.xlu1 %v2923_v24 }
 0x294   : > { %v2929_v26 = vsel %vm1383_vm2, %v2918_v23, -1e+30  ;;  %v2933_v28 = vadd.f32 %v2197_v25, %v2827_v54 }
 0x295   : > { %v1282_v27 = vpop.f32.mrf.mxu0  ;;  %1436 = vmax.xlane.f32.xlu0 %v2929_v26 }
 0x296   : > { %v2936_v29 = vadd.f32 %v2827_v54, %v1282_v27  ;;  %v2959_v36 = vsel %vm1383_vm2, %v2933_v28, -1e+30 }
 0x297   : > { %v2200_v31 = vpop.f32.mrf.mxu0  ;;  %1438 = vmax.xlane.f32.xlu1 %v2941_v30 }
 0x298   : > { %v2947_v32 = vsel %vm1383_vm2, %v2936_v29, -1e+30  ;;  %v2951_v34 = vadd.f32 %v2200_v31, %v2827_v54 }
 0x299   : > { %v1292_v33 = vpop.f32.mrf.mxu0  ;;  %1440 = vmax.xlane.f32.xlu0 %v2947_v32 }
 0x29a   : > { %v2954_v35 = vadd.f32 %v2827_v54, %v1292_v33  ;;  %v2977_v42 = vsel %vm1383_vm2, %v2951_v34, -1e+30 }
 0x29b   : > { %v2203_v37 = vpop.f32.mrf.mxu0  ;;  %1442 = vmax.xlane.f32.xlu1 %v2959_v36 }
 0x29c   : > { %v2965_v38 = vsel %vm1383_vm2, %v2954_v35, -1e+30  ;;  %v2969_v40 = vadd.f32 %v2203_v37, %v2827_v54 }
 0x29d   : > { %v1302_v39 = vpop.f32.mrf.mxu0  ;;  %1444 = vmax.xlane.f32.xlu0 %v2965_v38 }
 0x29e   : > { %v2972_v41 = vadd.f32 %v2827_v54, %v1302_v39  ;;  %v2995_v49 = vsel %vm1383_vm2, %v2969_v40, -1e+30 }
 0x29f   : > { %v2206_v43 = vpop.f32.mrf.mxu0  ;;  %1446 = vmax.xlane.f32.xlu1 %v2977_v42 }
 0x2a0   : > { %3439 = vst [vmem:[#allocation2_spill] sm:$0xff] %v2972_v41  ;;  %v2983_v44 = vsel %vm1383_vm2, %v2972_v41, -1e+30  ;;  %v2987_v47 = vadd.f32 %v2206_v43, %v2827_v54 }
 0x2a1   : > { %v1312_v46 = vpop.f32.mrf.mxu0  ;;  %1448 = vmax.xlane.f32.xlu0 %v2983_v44 }
 0x2a2   : > { %3440 = vst [vmem:[#allocation3_spill] sm:$0xff] %v2987_v47  ;;  %v2990_v48 = vadd.f32 %v2827_v54, %v1312_v46  ;;  %v3013_v57 = vsel %vm1383_vm2, %v2987_v47, -1e+30 }
 0x2a3   : > { %v2209_v18 = vpop.f32.mrf.mxu0  ;;  %1450 = vmax.xlane.f32.xlu1 %v2995_v49 }
 0x2a4   : > { %3441 = vst [vmem:[#allocation4_spill] sm:$0xff] %v2990_v48  ;;  %v3001_v50 = vsel %vm1383_vm2, %v2990_v48, -1e+30  ;;  %v3005_v52 = vadd.f32 %v2209_v18, %v2827_v54 }
 0x2a5   : > { %v1322_v51 = vpop.f32.mrf.mxu0  ;;  %1452 = vmax.xlane.f32.xlu0 %v3001_v50 }
 0x2a6   : > { %3442 = vst [vmem:[#allocation5_spill] sm:$0xff] %v3005_v52  ;;  %v3008_v55 = vadd.f32 %v2827_v54, %v1322_v51  ;;  %v3031_v9 = vsel %vm1383_vm2, %v3005_v52, -1e+30 }
 0x2a7   : > { %v2212_v60 = vpop.f32.mrf.mxu0  ;;  %1454 = vmax.xlane.f32.xlu1 %v3013_v57 }
 0x2a8   : > { %3443 = vst [vmem:[#allocation6_spill] sm:$0xff] %v3008_v55  ;;  %v3019_v62 = vsel %vm1383_vm2, %v3008_v55, -1e+30  ;;  %v3023_v3 = vadd.f32 %v2212_v60, %v2827_v54 }
 0x2a9   : > { %v1332_v2 = vpop.f32.mrf.mxu0  ;;  %1456 = vmax.xlane.f32.xlu0 %v3019_v62 }
 0x2aa   : > { %3444 = vst [vmem:[#allocation7_spill] sm:$0xff] %v3023_v3  ;;  %v3026_v7 = vadd.f32 %v2827_v54, %v1332_v2  ;;  %v3049_v27 = vsel %vm1383_vm2, %v3023_v3, -1e+30 }
 0x2ab   : > { %v2215_v12 = vpop.f32.mrf.mxu0  ;;  %1458 = vmax.xlane.f32.xlu1 %v3031_v9 }
 0x2ac   : > { %3445 = vst [vmem:[#allocation8_spill] sm:$0xff] %v3026_v7  ;;  %v3037_v14 = vsel %vm1383_vm2, %v3026_v7, -1e+30  ;;  %v3041_v21 = vadd.f32 %v2215_v12, %v2827_v54 }
 0x2ad   : > { %v1342_v19 = vpop.f32.mrf.mxu0  ;;  %1460 = vmax.xlane.f32.xlu0 %v3037_v14 }
 0x2ae   : > { %3446 = vst [vmem:[#allocation9_spill] sm:$0xff] %v3041_v21  ;;  %v3044_v25 = vadd.f32 %v2827_v54, %v1342_v19  ;;  %v3067_v46 = vsel %vm1383_vm2, %v3041_v21, -1e+30 }
 0x2af   : > { %v2218_v31 = vpop.f32.mrf.mxu0  ;;  %1462 = vmax.xlane.f32.xlu1 %v3049_v27 }
 0x2b0   : > { %3447 = vst [vmem:[#allocation10_spill] sm:$0xff] %v3044_v25  ;;  %v3055_v33 = vsel %vm1383_vm2, %v3044_v25, -1e+30  ;;  %v3059_v39 = vadd.f32 %v2218_v31, %v2827_v54 }
 0x2b1   : > { %v1352_v37 = vpop.f32.mrf.mxu0  ;;  %1464 = vmax.xlane.f32.xlu0 %v3055_v33 }
 0x2b2   : > { %3448 = vst [vmem:[#allocation11_spill] sm:$0xff] %v3059_v39  ;;  %v3062_v43 = vadd.f32 %v2827_v54, %v1352_v37  ;;  %v3085_v19 = vsel %vm1383_vm2, %v3059_v39, -1e+30 }
 0x2b3   : > { %v2221_v18 = vpop.f32.mrf.mxu0  ;;  %1466 = vmax.xlane.f32.xlu1 %v3067_v46 }
 0x2b4   : > { %3449 = vst [vmem:[#allocation12_spill] sm:$0xff] %v3062_v43  ;;  %v3073_v51 = vsel %vm1383_vm2, %v3062_v43, -1e+30  ;;  %v3077_v2 = vadd.f32 %v2221_v18, %v2827_v54 }
 0x2b5   : > { %v1362_v60 = vpop.f32.mrf.mxu0  ;;  %1468 = vmax.xlane.f32.xlu0 %v3073_v51 }
 0x2b6   : > { %3450 = vst [vmem:[#allocation13_spill] sm:$0xff] %v3077_v2  ;;  %v3080_v12 = vadd.f32 %v2827_v54, %v1362_v60  ;;  %v3103_v39 = vsel %vm1383_vm2, %v3077_v2, -1e+30 }
 0x2b7   : > { %v2224_v31 = vpop.f32.mrf.mxu0  ;;  %1470 = vmax.xlane.f32.xlu1 %v3085_v19 }
 0x2b8   : > { %3451 = vst [vmem:[#allocation14_spill] sm:$0xff] %v3080_v12  ;;  %v3091_v37 = vsel %vm1383_vm2, %v3080_v12, -1e+30  ;;  %v3095_v18 = vadd.f32 %v2224_v31, %v2827_v54 }
 0x2b9   : > { %v1372_v43 = vpop.f32.mrf.mxu0  ;;  %1472 = vmax.xlane.f32.xlu0 %v3091_v37 }
 0x2ba   : > { %3452 = vst [vmem:[#allocation15_spill] sm:$0xff] %v3095_v18  ;;  %v3098_v60 = vadd.f32 %v2827_v54, %v1372_v43  ;;  %v3115_v31 = vsel %vm1383_vm2, %v3095_v18, -1e+30 }
 0x2bb   : > { %1474 = vmax.xlane.f32.xlu1 %v3103_v39 }
 0x2bc   : > { %3453 = vst [vmem:[#allocation16_spill] sm:$0xff] %v3098_v60  ;;  %v3109_v12 = vsel %vm1383_vm2, %v3098_v60, -1e+30 }
 0x2bd   : > { %1476 = vmax.xlane.f32.xlu0 %v3109_v12 }
 0x2bf   : > { %1478 = vmax.xlane.f32.xlu1 %v3115_v31 }
 0x308   : > { %v1419_v54 = vpop.xlane.xlu0 %1418 }
 0x309   : > { %v1481_v43 = vsub.f32 %v2839_v59, %v1419_v54 }
 0x30b   : > { %v1514_v2 = vmul.f32 1.442695, %v1481_v43 }
 0x30c   : > { %v1423_v25 = vpop.xlane.xlu1 %1422  ;;  %v1417_v21 = vpop.xlane.xlu0 %1416 }
 0x30d   : > { %2363 = vpow2.f32 %v1514_v2  ;;  %v1483_v7 = vsub.f32 %v2851_v0, %v1423_v25  ;;  %v1480_v60 = vsub.f32 %v2856_v1, %v1417_v21 }
 0x30f   : > { %v1518_v3 = vmul.f32 1.442695, %v1483_v7  ;;  %v1512_v55 = vmul.f32 1.442695, %v1480_v60 }
 0x310   : > { %v1421_v52 = vpop.xlane.xlu1 %1420 }
 0x311   : > { %2365 = vpow2.f32 %v1518_v3  ;;  %v1482_v18 = vsub.f32 %v2869_v6, %v1421_v52 }
 0x312   : > { %2367 = vpow2.f32 %v1512_v55  ;;  %v1425_v48 = vpop.xlane.xlu0 %1424 }
 0x313   : > { %v1516_v47 = vmul.f32 1.442695, %v1482_v18  ;;  %v1484_v41 = vsub.f32 %v2875_v8, %v1425_v48 }
 0x314   : > { %v1427_v59 = vpop.xlane.xlu1 %1426 }
 0x315   : > { %2369 = vpow2.f32 %v1516_v47  ;;  %v1485_v54 = vsub.f32 %v2887_v11, %v1427_v59  ;;  %v1520_v2 = vmul.f32 1.442695, %v1484_v41 }
 0x316   : > { %v1429_v43 = vpop.xlane.xlu0 %1428 }
 0x317   : > { %v1522_v0 = vmul.f32 1.442695, %v1485_v54  ;;  %v1486_v1 = vsub.f32 %v2893_v13, %v1429_v43 }
 0x318   : > { %v1431_v7 = vpop.xlane.xlu1 %1430 }
 0x319   : > { %2371 = vpow2.f32 %v1522_v0  ;;  %v1487_v3 = vsub.f32 %v2905_v17, %v1431_v7  ;;  %v1524_v6 = vmul.f32 1.442695, %v1486_v1 }
 0x31a   : > { %v3126_v21 = vpop.eup %2363  ;;  %2373 = vpow2.f32 %v1520_v2  ;;  %v1433_v52 = vpop.xlane.xlu0 %1432 }
 0x31b   : > { %v1526_v55 = vmul.f32 1.442695, %v1487_v3  ;;  %v1488_v8 = vsub.f32 %v2911_v20, %v1433_v52  ;;  %1578 = vadd.xlane.f32.xlu1 %v3126_v21 }
 0x31c   : > { %v1435_v11 = vpop.xlane.xlu1 %1434 }
 0x31d   : > { %2375 = vpow2.f32 %v1526_v55  ;;  %v1489_v41 = vsub.f32 %v2923_v24, %v1435_v11  ;;  %v1528_v13 = vmul.f32 1.442695, %v1488_v8 }
 0x31e   : > { %v3131_v47 = vpop.eup %2365  ;;  %2377 = vpow2.f32 %v1524_v6  ;;  %v1437_v48 = vpop.xlane.xlu0 %1436 }
 0x31f   : > { %v3133_v17 = vpop.eup %2367  ;;  %v1530_v25 = vmul.f32 1.442695, %v1489_v41  ;;  %v1490_v18 = vsub.f32 %v2929_v26, %v1437_v48  ;;  %1582 = vadd.xlane.f32.xlu1 %v3131_v47 }
 0x320   : > { %1576 = vadd.xlane.f32.xlu0 %v3133_v17  ;;  %v1439_v20 = vpop.xlane.xlu1 %1438 }
 0x321   : > { %2379 = vpow2.f32 %v1530_v25  ;;  %v1491_v60 = vsub.f32 %v2941_v30, %v1439_v20  ;;  %v1532_v24 = vmul.f32 1.442695, %v1490_v18 }
 0x322   : > { %v3139_v59 = vpop.eup %2369  ;;  %2381 = vpow2.f32 %v1528_v13  ;;  %v1441_v54 = vpop.xlane.xlu0 %1440 }
 0x323   : > { %v1534_v2 = vmul.f32 1.442695, %v1491_v60  ;;  %v1492_v43 = vsub.f32 %v2947_v32, %v1441_v54 }
 0x324   : > { %1580 = vadd.xlane.f32.xlu0 %v3139_v59  ;;  %v1443_v0 = vpop.xlane.xlu1 %1442 }
 0x325   : > { %2383 = vpow2.f32 %v1534_v2  ;;  %v1493_v26 = vsub.f32 %v2959_v36, %v1443_v0  ;;  %v1536_v7 = vmul.f32 1.442695, %v1492_v43 }
 0x326   : > { %v3144_v1 = vpop.eup %2371  ;;  %2385 = vpow2.f32 %v1532_v24  ;;  %v1445_v3 = vpop.xlane.xlu0 %1444 }
 0x327   : > { %v3146_v30 = vpop.eup %2373  ;;  %v1538_v6 = vmul.f32 1.442695, %v1493_v26  ;;  %v1494_v52 = vsub.f32 %v2965_v38, %v1445_v3  ;;  %1586 = vadd.xlane.f32.xlu1 %v3144_v1 }
 0x328   : > { %1584 = vadd.xlane.f32.xlu0 %v3146_v30  ;;  %v1447_v32 = vpop.xlane.xlu1 %1446 }
 0x329   : > { %2387 = vpow2.f32 %v1538_v6  ;;  %v1495_v55 = vsub.f32 %v2977_v42, %v1447_v32  ;;  %v1540_v36 = vmul.f32 1.442695, %v1494_v52 }
 0x32a   : > { %v3152_v8 = vpop.eup %2375  ;;  %2389 = vpow2.f32 %v1536_v7  ;;  %v1449_v11 = vpop.xlane.xlu0 %1448 }
 0x32b   : > { %v3154_v41 = vpop.eup %2377  ;;  %v1542_v13 = vmul.f32 1.442695, %v1495_v55  ;;  %v1496_v48 = vsub.f32 %v2983_v44, %v1449_v11  ;;  %1590 = vadd.xlane.f32.xlu1 %v3152_v8 }
 0x32c   : > { %1588 = vadd.xlane.f32.xlu0 %v3154_v41  ;;  %v1451_v38 = vpop.xlane.xlu1 %1450 }
 0x32d   : > { %2391 = vpow2.f32 %v1542_v13  ;;  %v1497_v25 = vsub.f32 %v2995_v49, %v1451_v38  ;;  %v1544_v42 = vmul.f32 1.442695, %v1496_v48 }
 0x32e   : > { %v3160_v18 = vpop.eup %2379  ;;  %2393 = vpow2.f32 %v1540_v36  ;;  %v1453_v20 = vpop.xlane.xlu0 %1452 }
 0x32f   : > { %v3162_v60 = vpop.eup %2381  ;;  %v1546_v24 = vmul.f32 1.442695, %v1497_v25  ;;  %v1498_v54 = vsub.f32 %v3001_v50, %v1453_v20  ;;  %1594 = vadd.xlane.f32.xlu1 %v3160_v18 }
 0x330   : > { %1592 = vadd.xlane.f32.xlu0 %v3162_v60  ;;  %v1455_v44 = vpop.xlane.xlu1 %1454 }
 0x331   : > { %2395 = vpow2.f32 %v1546_v24  ;;  %v1499_v2 = vsub.f32 %v3013_v57, %v1455_v44  ;;  %v1548_v49 = vmul.f32 1.442695, %v1498_v54 }
 0x332   : > { %v3168_v43 = vpop.eup %2383  ;;  %2397 = vpow2.f32 %v1544_v42  ;;  %v1457_v0 = vpop.xlane.xlu0 %1456 }
 0x333   : > { %v3170_v26 = vpop.eup %2385  ;;  %v1550_v7 = vmul.f32 1.442695, %v1499_v2  ;;  %v1500_v3 = vsub.f32 %v3019_v62, %v1457_v0  ;;  %1598 = vadd.xlane.f32.xlu1 %v3168_v43 }
 0x334   : > { %1596 = vadd.xlane.f32.xlu0 %v3170_v26  ;;  %v1459_v50 = vpop.xlane.xlu1 %1458 }
 0x335   : > { %2399 = vpow2.f32 %v1550_v7  ;;  %v1501_v6 = vsub.f32 %v3031_v9, %v1459_v50  ;;  %v1552_v57 = vmul.f32 1.442695, %v1500_v3 }
 0x336   : > { %v3176_v52 = vpop.eup %2387  ;;  %2401 = vpow2.f32 %v1548_v49  ;;  %v1461_v32 = vpop.xlane.xlu0 %1460 }
 0x337   : > { %v3178_v55 = vpop.eup %2389  ;;  %v1554_v36 = vmul.f32 1.442695, %v1501_v6  ;;  %v1502_v11 = vsub.f32 %v3037_v14, %v1461_v32  ;;  %1602 = vadd.xlane.f32.xlu1 %v3176_v52 }
 0x338   : > { %1600 = vadd.xlane.f32.xlu0 %v3178_v55  ;;  %v1463_v62 = vpop.xlane.xlu1 %1462 }
 0x339   : > { %2403 = vpow2.f32 %v1554_v36  ;;  %v1503_v13 = vsub.f32 %v3049_v27, %v1463_v62  ;;  %v1556_v9 = vmul.f32 1.442695, %v1502_v11 }
 0x33a   : > { %v3184_v48 = vpop.eup %2391  ;;  %2405 = vpow2.f32 %v1552_v57  ;;  %v1465_v38 = vpop.xlane.xlu0 %1464 }
 0x33b   : > { %v3186_v25 = vpop.eup %2393  ;;  %v1558_v42 = vmul.f32 1.442695, %v1503_v13  ;;  %v1504_v20 = vsub.f32 %v3055_v33, %v1465_v38  ;;  %1606 = vadd.xlane.f32.xlu1 %v3184_v48 }
 0x33c   : > { %1604 = vadd.xlane.f32.xlu0 %v3186_v25  ;;  %v1467_v14 = vpop.xlane.xlu1 %1466 }
 0x33d   : > { %2407 = vpow2.f32 %v1558_v42  ;;  %v1505_v24 = vsub.f32 %v3067_v46, %v1467_v14  ;;  %v1560_v27 = vmul.f32 1.442695, %v1504_v20 }
 0x33e   : > { %v3192_v54 = vpop.eup %2395  ;;  %2409 = vpow2.f32 %v1556_v9  ;;  %v1469_v44 = vpop.xlane.xlu0 %1468 }
 0x33f   : > { %v3194_v2 = vpop.eup %2397  ;;  %v1562_v49 = vmul.f32 1.442695, %v1505_v24  ;;  %v1506_v0 = vsub.f32 %v3073_v51, %v1469_v44  ;;  %1610 = vadd.xlane.f32.xlu1 %v3192_v54 }
 0x340   : > { %1608 = vadd.xlane.f32.xlu0 %v3194_v2  ;;  %v1471_v33 = vpop.xlane.xlu1 %1470 }
 0x341   : > { %2411 = vpow2.f32 %v1562_v49  ;;  %v1507_v7 = vsub.f32 %v3085_v19, %v1471_v33  ;;  %v1564_v46 = vmul.f32 1.442695, %v1506_v0 }
 0x342   : > { %v3200_v3 = vpop.eup %2399  ;;  %2413 = vpow2.f32 %v1560_v27  ;;  %v1473_v50 = vpop.xlane.xlu0 %1472 }
 0x343   : > { %v3202_v6 = vpop.eup %2401  ;;  %v1566_v57 = vmul.f32 1.442695, %v1507_v7  ;;  %v1508_v32 = vsub.f32 %v3091_v37, %v1473_v50  ;;  %1614 = vadd.xlane.f32.xlu1 %v3200_v3 }
 0x344   : > { %1612 = vadd.xlane.f32.xlu0 %v3202_v6  ;;  %v1475_v51 = vpop.xlane.xlu1 %1474 }
 0x345   : > { %2415 = vpow2.f32 %v1566_v57  ;;  %v1509_v36 = vsub.f32 %v3103_v39, %v1475_v51  ;;  %v1568_v19 = vmul.f32 1.442695, %v1508_v32 }
 0x346   : > { %v3208_v11 = vpop.eup %2403  ;;  %2417 = vpow2.f32 %v1564_v46  ;;  %v1477_v62 = vpop.xlane.xlu0 %1476 }
 0x347   : > { %v3210_v13 = vpop.eup %2405  ;;  %v1570_v9 = vmul.f32 1.442695, %v1509_v36  ;;  %v1510_v38 = vsub.f32 %v3109_v12, %v1477_v62  ;;  %1618 = vadd.xlane.f32.xlu1 %v3208_v11 }
 0x348   : > { %1616 = vadd.xlane.f32.xlu0 %v3210_v13  ;;  %v1479_v37 = vpop.xlane.xlu1 %1478 }
 0x349   : > { %2419 = vpow2.f32 %v1570_v9  ;;  %v1511_v42 = vsub.f32 %v3115_v31, %v1479_v37  ;;  %v1572_v39 = vmul.f32 1.442695, %v1510_v38 }
 0x34a   : > { %v3216_v20 = vpop.eup %2407  ;;  %2421 = vpow2.f32 %v1568_v19 }
 0x34b   : > { %v3218_v14 = vpop.eup %2409  ;;  %v1574_v24 = vmul.f32 1.442695, %v1511_v42  ;;  %1622 = vadd.xlane.f32.xlu1 %v3216_v20 }
 0x34c   : > { %1620 = vadd.xlane.f32.xlu0 %v3218_v14 }
 0x34d   : > { %2423 = vpow2.f32 %v1574_v24 }
 0x34e   : > { %v3222_v12 = vpop.eup %2411  ;;  %2425 = vpow2.f32 %v1572_v39 }
 0x34f   : > { %v3224_v27 = vpop.eup %2413  ;;  %1626 = vadd.xlane.f32.xlu1 %v3222_v12 }
 0x350   : > { %1624 = vadd.xlane.f32.xlu0 %v3224_v27 }
 0x352   : > { %v3228_v31 = vpop.eup %2415 }
 0x353   : > { %v3230_v44 = vpop.eup %2417  ;;  %1630 = vadd.xlane.f32.xlu1 %v3228_v31 }
 0x354   : > { %1628 = vadd.xlane.f32.xlu0 %v3230_v44 }
 0x356   : > { %v3234_v49 = vpop.eup %2419 }
 0x357   : > { %v3236_v0 = vpop.eup %2421  ;;  %1634 = vadd.xlane.f32.xlu1 %v3234_v49 }
 0x358   : > { %1632 = vadd.xlane.f32.xlu0 %v3236_v0 }
 0x35a   : > { %v3240_v33 = vpop.eup %2423 }
 0x35b   : > { %v3242_v7 = vpop.eup %2425  ;;  %1638 = vadd.xlane.f32.xlu1 %v3240_v33 }
 0x35c   : > { %1636 = vadd.xlane.f32.xlu0 %v3242_v7 }
 0x3a4   : > { %v1579_v46 = vpop.xlane.xlu1 %1578 }
 0x3a5   : > { %2427 = vrcp.f32 %v1579_v46 }
 0x3a8   : > { %v1583_v50 = vpop.xlane.xlu1 %1582 }
 0x3a9   : > { %2429 = vrcp.f32 %v1583_v50  ;;  %v1577_v57 = vpop.xlane.xlu0 %1576 }
 0x3aa   : > { %2431 = vrcp.f32 %v1577_v57 }
 0x3ad   : > { %v1581_v32 = vpop.xlane.xlu0 %1580 }
 0x3ae   : > { %2433 = vrcp.f32 %v1581_v32 }
 0x3b0   : > { %v1587_v51 = vpop.xlane.xlu1 %1586 }
 0x3b1   : > { %2435 = vrcp.f32 %v1587_v51  ;;  %v1585_v36 = vpop.xlane.xlu0 %1584 }
 0x3b2   : > { %v2428_v19 = vpop.eup %2427  ;;  %2437 = vrcp.f32 %v1585_v36 }
 0x3b3   : > { %v1673_v62 = vmul.f32 %v2428_v19, %v3126_v21 }
 0x3b4   : > { %v1591_v9 = vpop.xlane.xlu1 %1590 }
 0x3b5   : > { %v1705_v38 = vsel %vm1383_vm2, %v1673_v62, %v2831_v56  ;;  %2439 = vrcp.f32 %v1591_v9  ;;  %v1589_v37 = vpop.xlane.xlu0 %1588 }
 0x3b6   : > { %v2430_v42 = vpop.eup %2429  ;;  %1737 = vst [vmem:[%s3251_s10 + $0x8] sm:$0xff] %v1705_v38  ;;  %2441 = vrcp.f32 %v1589_v37 }
 0x3b7   : > { %v2432_v39 = vpop.eup %2431  ;;  %v1675_v24 = vmul.f32 %v2430_v42, %v3131_v47 }
 0x3b8   : > { %v1672_v46 = vmul.f32 %v2432_v39, %v3133_v17  ;;  %v1595_v50 = vpop.xlane.xlu1 %1594 }
 0x3b9   : > { %v1707_v21 = vsel %vm1383_vm2, %v1675_v24, %v2843_v61  ;;  %2443 = vrcp.f32 %v1595_v50  ;;  %v1593_v57 = vpop.xlane.xlu0 %1592 }
 0x3ba   : > { %1739 = vst [vmem:[%s3251_s10 + $0x18] sm:$0xff] %v1707_v21  ;;  %v1704_v56 = vsel %vm1383_vm2, %v1672_v46, %v2834_v58  ;;  %2445 = vrcp.f32 %v1593_v57 }
 0x3bb   : > { %v2434_v32 = vpop.eup %2433  ;;  %1736 = vst [vmem:[%s3251_s10] sm:$0xff] %v1704_v56 }
 0x3bc   : > { %v1674_v47 = vmul.f32 %v2434_v32, %v3139_v59  ;;  %v1599_v17 = vpop.xlane.xlu1 %1598 }
 0x3bd   : > { %2447 = vrcp.f32 %v1599_v17  ;;  %v1597_v51 = vpop.xlane.xlu0 %1596 }
 0x3be   : > { %v2436_v36 = vpop.eup %2435  ;;  %v1706_v61 = vsel %vm1383_vm2, %v1674_v47, %v2846_v63  ;;  %2449 = vrcp.f32 %v1597_v51 }
 0x3bf   : > { %v2438_v19 = vpop.eup %2437  ;;  %1738 = vst [vmem:[%s3251_s10 + $0x10] sm:$0xff] %v1706_v61  ;;  %v1677_v58 = vmul.f32 %v2436_v36, %v3144_v1 }
 0x3c0   : > { %v1676_v62 = vmul.f32 %v2438_v19, %v3146_v30  ;;  %v1603_v9 = vpop.xlane.xlu1 %1602 }
 0x3c1   : > { %v1709_v59 = vsel %vm1383_vm2, %v1677_v58, %v2861_v4  ;;  %2451 = vrcp.f32 %v1603_v9  ;;  %v1601_v38 = vpop.xlane.xlu0 %1600 }
 0x3c2   : > { %v2440_v37 = vpop.eup %2439  ;;  %1741 = vst [vmem:[%s3251_s10 + $0x28] sm:$0xff] %v1709_v59  ;;  %v1708_v63 = vsel %vm1383_vm2, %v1676_v62, %v2864_v5  ;;  %2453 = vrcp.f32 %v1601_v38 }
 0x3c3   : > { %v2442_v42 = vpop.eup %2441  ;;  %1740 = vst [vmem:[%s3251_s10 + $0x20] sm:$0xff] %v1708_v63  ;;  %v1679_v1 = vmul.f32 %v2440_v37, %v3152_v8 }
 0x3c4   : > { %v1678_v30 = vmul.f32 %v2442_v42, %v3154_v41  ;;  %v1607_v39 = vpop.xlane.xlu1 %1606 }
 0x3c5   : > { %v1711_v4 = vsel %vm1383_vm2, %v1679_v1, %v2879_v10  ;;  %2455 = vrcp.f32 %v1607_v39  ;;  %v1605_v24 = vpop.xlane.xlu0 %1604 }
 0x3c6   : > { %v2444_v46 = vpop.eup %2443  ;;  %1743 = vst [vmem:[%s3251_s10 + $0x38] sm:$0xff] %v1711_v4  ;;  %v1710_v5 = vsel %vm1383_vm2, %v1678_v30, %v2882_v45  ;;  %2457 = vrcp.f32 %v1605_v24  ;;  %v3454_v30 = vld [vmem:[#allocation2_spill] sm:$0xff]  ;;  %v3455_v24 = vld [vmem:[#allocation3_spill] sm:$0xff] }
 0x3c7   : > { %v2446_v50 = vpop.eup %2445  ;;  %1742 = vst [vmem:[%s3251_s10 + $0x30] sm:$0xff] %v1710_v5  ;;  %v1681_v8 = vmul.f32 %v2444_v46, %v3160_v18 }
 0x3c8   : > { %v1680_v41 = vmul.f32 %v2446_v50, %v3162_v60  ;;  %v1611_v21 = vpop.xlane.xlu1 %1610  ;;  %v3456_v50 = vld [vmem:[#allocation4_spill] sm:$0xff] }
 0x3c9   : > { %v1713_v10 = vsel %vm1383_vm2, %v1681_v8, %v2897_v15  ;;  %2459 = vrcp.f32 %v1611_v21  ;;  %v1609_v57 = vpop.xlane.xlu0 %1608 }
 0x3ca   : > { %v2448_v56 = vpop.eup %2447  ;;  %1745 = vst [vmem:[%s3251_s10 + $0x48] sm:$0xff] %v1713_v10  ;;  %v1712_v45 = vsel %vm1383_vm2, %v1680_v41, %v2900_v16  ;;  %2461 = vrcp.f32 %v1609_v57  ;;  %v3457_v10 = vld [vmem:[#allocation5_spill] sm:$0xff] }
 0x3cb   : > { %v2450_v32 = vpop.eup %2449  ;;  %1744 = vst [vmem:[%s3251_s10 + $0x40] sm:$0xff] %v1712_v45  ;;  %v1683_v18 = vmul.f32 %v2448_v56, %v3168_v43 }
 0x3cc   : > { %v1682_v60 = vmul.f32 %v2450_v32, %v3170_v26  ;;  %v1615_v47 = vpop.xlane.xlu1 %1614  ;;  %v3458_v32 = vld [vmem:[#allocation6_spill] sm:$0xff] }
 0x3cd   : > { %v1715_v15 = vsel %vm1383_vm2, %v1683_v18, %v2915_v22  ;;  %2463 = vrcp.f32 %v1615_v47  ;;  %v1613_v17 = vpop.xlane.xlu0 %1612 }
 0x3ce   : > { %v2452_v51 = vpop.eup %2451  ;;  %1747 = vst [vmem:[%s3251_s10 + $0x58] sm:$0xff] %v1715_v15  ;;  %v1714_v16 = vsel %vm1383_vm2, %v1682_v60, %v2918_v23  ;;  %2465 = vrcp.f32 %v1613_v17  ;;  %v3459_v15 = vld [vmem:[#allocation7_spill] sm:$0xff] }
 0x3cf   : > { %v2454_v36 = vpop.eup %2453  ;;  %1746 = vst [vmem:[%s3251_s10 + $0x50] sm:$0xff] %v1714_v16  ;;  %v1685_v43 = vmul.f32 %v2452_v51, %v3176_v52 }
 0x3d0   : > { %v1684_v26 = vmul.f32 %v2454_v36, %v3178_v55  ;;  %v1619_v61 = vpop.xlane.xlu1 %1618  ;;  %v3460_v36 = vld [vmem:[#allocation8_spill] sm:$0xff] }
 0x3d1   : > { %v1717_v22 = vsel %vm1383_vm2, %v1685_v43, %v2933_v28  ;;  %2467 = vrcp.f32 %v1619_v61  ;;  %v1617_v19 = vpop.xlane.xlu0 %1616  ;;  %v3461_v61 = vld [vmem:[#allocation9_spill] sm:$0xff] }
 0x3d2   : > { %v2456_v58 = vpop.eup %2455  ;;  %1749 = vst [vmem:[%s3251_s10 + $0x68] sm:$0xff] %v1717_v22  ;;  %v1716_v23 = vsel %vm1383_vm2, %v1684_v26, %v2936_v29  ;;  %2469 = vrcp.f32 %v1617_v19 }
 0x3d3   : > { %v2458_v62 = vpop.eup %2457  ;;  %1748 = vst [vmem:[%s3251_s10 + $0x60] sm:$0xff] %v1716_v23  ;;  %v1687_v52 = vmul.f32 %v2456_v58, %v3184_v48  ;;  %v3462_v58 = vld [vmem:[#allocation10_spill] sm:$0xff] }
 0x3d4   : > { %v1686_v55 = vmul.f32 %v2458_v62, %v3186_v25  ;;  %v1623_v9 = vpop.xlane.xlu1 %1622 }
 0x3d5   : > { %v1719_v28 = vsel %vm1383_vm2, %v1687_v52, %v2951_v34  ;;  %2471 = vrcp.f32 %v1623_v9  ;;  %v1621_v59 = vpop.xlane.xlu0 %1620 }
 0x3d6   : > { %v2460_v38 = vpop.eup %2459  ;;  %1751 = vst [vmem:[%s3251_s10 + $0x78] sm:$0xff] %v1719_v28  ;;  %v1718_v29 = vsel %vm1383_vm2, %v1686_v55, %v2954_v35  ;;  %2473 = vrcp.f32 %v1621_v59  ;;  %v3463_v55 = vld [vmem:[#allocation11_spill] sm:$0xff]  ;;  %v3464_v28 = vld [vmem:[#allocation12_spill] sm:$0xff] }
 0x3d7   : > { %v2462_v37 = vpop.eup %2461  ;;  %1750 = vst [vmem:[%s3251_s10 + $0x70] sm:$0xff] %v1718_v29  ;;  %v1689_v48 = vmul.f32 %v2460_v38, %v3192_v54 }
 0x3d8   : > { %v1688_v25 = vmul.f32 %v2462_v37, %v3194_v2  ;;  %v1627_v63 = vpop.xlane.xlu1 %1626  ;;  %v3465_v37 = vld [vmem:[#allocation13_spill] sm:$0xff] }
 0x3d9   : > { %v1721_v34 = vsel %vm1383_vm2, %v1689_v48, %v2969_v40  ;;  %2475 = vrcp.f32 %v1627_v63  ;;  %v1625_v42 = vpop.xlane.xlu0 %1624 }
 0x3da   : > { %v2464_v1 = vpop.eup %2463  ;;  %1753 = vst [vmem:[%s3251_s10 + $0x88] sm:$0xff] %v1721_v34  ;;  %v1720_v35 = vsel %vm1383_vm2, %v1688_v25, %v3454_v30  ;;  %2477 = vrcp.f32 %v1625_v42  ;;  %v3466_v25 = vld [vmem:[#allocation14_spill] sm:$0xff]  ;;  %v3467_v30 = vld [vmem:[#allocation15_spill] sm:$0xff] }
 0x3db   : > { %v2466_v39 = vpop.eup %2465  ;;  %1752 = vst [vmem:[%s3251_s10 + $0x80] sm:$0xff] %v1720_v35  ;;  %v1691_v54 = vmul.f32 %v2464_v1, %v3200_v3 }
 0x3dc   : > { %v1690_v2 = vmul.f32 %v2466_v39, %v3202_v6  ;;  %v1631_v4 = vpop.xlane.xlu1 %1630 }
 0x3dd   : > { %v1723_v40 = vsel %vm1383_vm2, %v1691_v54, %v3455_v24  ;;  %2479 = vrcp.f32 %v1631_v4  ;;  %v1629_v46 = vpop.xlane.xlu0 %1628 }
 0x3de   : > { %v2468_v5 = vpop.eup %2467  ;;  %1755 = vst [vmem:[%s3251_s10 + $0x98] sm:$0xff] %v1723_v40  ;;  %v1722_v8 = vsel %vm1383_vm2, %v1690_v2, %v3456_v50  ;;  %2481 = vrcp.f32 %v1629_v46 }
 0x3df   : > { %v2470_v41 = vpop.eup %2469  ;;  %1754 = vst [vmem:[%s3251_s10 + $0x90] sm:$0xff] %v1722_v8  ;;  %v1693_v3 = vmul.f32 %v2468_v5, %v3208_v11 }
 0x3e0   : > { %v1692_v6 = vmul.f32 %v2470_v41, %v3210_v13  ;;  %v1635_v21 = vpop.xlane.xlu1 %1634 }
 0x3e1   : > { %v1725_v57 = vsel %vm1383_vm2, %v1693_v3, %v3457_v10  ;;  %2483 = vrcp.f32 %v1635_v21  ;;  %v1633_v56 = vpop.xlane.xlu0 %1632 }
 0x3e2   : > { %v2472_v45 = vpop.eup %2471  ;;  %1757 = vst [vmem:[%s3251_s10 + $0xa8] sm:$0xff] %v1725_v57  ;;  %v1724_v18 = vsel %vm1383_vm2, %v1692_v6, %v3458_v32  ;;  %2485 = vrcp.f32 %v1633_v56 }
 0x3e3   : > { %v2474_v60 = vpop.eup %2473  ;;  %1756 = vst [vmem:[%s3251_s10 + $0xa0] sm:$0xff] %v1724_v18  ;;  %v1695_v11 = vmul.f32 %v2472_v45, %v3216_v20 }
 0x3e4   : > { %v1694_v13 = vmul.f32 %v2474_v60, %v3218_v14  ;;  %v1639_v47 = vpop.xlane.xlu1 %1638 }
 0x3e5   : > { %v1727_v17 = vsel %vm1383_vm2, %v1695_v11, %v3459_v15  ;;  %2487 = vrcp.f32 %v1639_v47  ;;  %v1637_v51 = vpop.xlane.xlu0 %1636 }
 0x3e6   : > { %v2476_v16 = vpop.eup %2475  ;;  %1759 = vst [vmem:[%s3251_s10 + $0xb8] sm:$0xff] %v1727_v17  ;;  %v1726_v43 = vsel %vm1383_vm2, %v1694_v13, %v3460_v36  ;;  %2489 = vrcp.f32 %v1637_v51 }
 0x3e7   : > { %v2478_v20 = vpop.eup %2477  ;;  %1758 = vst [vmem:[%s3251_s10 + $0xb0] sm:$0xff] %v1726_v43  ;;  %v1697_v14 = vmul.f32 %v2476_v16, %v3222_v12 }
 0x3e8   : > { %v1696_v26 = vmul.f32 %v2478_v20, %v3224_v27 }
 0x3e9   : > { %v1729_v22 = vsel %vm1383_vm2, %v1697_v14, %v3461_v61 }
 0x3ea   : > { %v2480_v19 = vpop.eup %2479  ;;  %1761 = vst [vmem:[%s3251_s10 + $0xc8] sm:$0xff] %v1729_v22  ;;  %v1728_v23 = vsel %vm1383_vm2, %v1696_v26, %v3462_v58 }
 0x3eb   : > { %v2482_v62 = vpop.eup %2481  ;;  %1760 = vst [vmem:[%s3251_s10 + $0xc0] sm:$0xff] %v1728_v23  ;;  %v1699_v52 = vmul.f32 %v2480_v19, %v3228_v31 }
 0x3ec   : > { %v1698_v12 = vmul.f32 %v2482_v62, %v3230_v44 }
 0x3ed   : > { %v1731_v27 = vsel %vm1383_vm2, %v1699_v52, %v3463_v55 }
 0x3ee   : > { %v2484_v9 = vpop.eup %2483  ;;  %1763 = vst [vmem:[%s3251_s10 + $0xd8] sm:$0xff] %v1731_v27  ;;  %v1730_v59 = vsel %vm1383_vm2, %v1698_v12, %v3464_v28 }
 0x3ef   : > { %v2486_v38 = vpop.eup %2485  ;;  %1762 = vst [vmem:[%s3251_s10 + $0xd0] sm:$0xff] %v1730_v59  ;;  %v1701_v29 = vmul.f32 %v2484_v9, %v3234_v49 }
 0x3f0   : > { %v1700_v31 = vmul.f32 %v2486_v38, %v3236_v0  ;;  %v3468_v0 = vld [vmem:[#allocation16_spill] sm:$0xff] }
 0x3f1   : > { %v1733_v44 = vsel %vm1383_vm2, %v1701_v29, %v3465_v37 }
 0x3f2   : > { %v2488_v48 = vpop.eup %2487  ;;  %1765 = vst [vmem:[%s3251_s10 + $0xe8] sm:$0xff] %v1733_v44  ;;  %v1732_v63 = vsel %vm1383_vm2, %v1700_v31, %v3466_v25 }
 0x3f3   : > { %v2490_v34 = vpop.eup %2489  ;;  %1764 = vst [vmem:[%s3251_s10 + $0xe0] sm:$0xff] %v1732_v63  ;;  %v1703_v42 = vmul.f32 %v2488_v48, %v3240_v33 }
 0x3f4   : > { %v1702_v1 = vmul.f32 %v2490_v34, %v3242_v7 }
 0x3f5   : > { %v1735_v49 = vsel %vm1383_vm2, %v1703_v42, %v3467_v30 }
 0x3f6   : > { %1767 = vst [vmem:[%s3251_s10 + $0xf8] sm:$0xff] %v1735_v49  ;;  %v1734_v35 = vsel %vm1383_vm2, %v1702_v1, %v3468_v0 }
 0x3f7   : > { %1766 = vst [vmem:[%s3251_s10 + $0xf0] sm:$0xff] %v1734_v35 }
 0x3f8 PF: > { %s17_s24 = sadd.s32 1, %s2497_s24  }
 0x3f9   : > { %p14_p4 = scmp.ge.s32.totalorder %s17_s24, 4  }
 0x3fb   :  { %16 = sbr.rel (!%p14_p4) target bundleno = 1 (0x1), region = 78 }

</bundles_post_ra>
